<compile_context>
chip_gen: v5e
topology: v5e:2x2
jax: 0.10.0
libtpu: 0.0.40
codegen_flags: <defaults>
</compile_context>

<pallas_src>
import jax
import jax.numpy as jnp
from jax import lax
from jax.experimental import pallas as pl
from jax.experimental.pallas import tpu as pltpu


# =============================== Pallas kernels ===============================

def _boxes_kernel(mask_ref, box_ref):
    # mask_ref: (1, M, H, W) float32; box_ref: (1, 4, M) float32 packed [xmin,ymin,xmax,ymax].
    m = mask_ref[0]                                   # (M, H, W)
    Mm, H, W = m.shape

    # 1-D projections first (cheap XLU reduces) instead of full (M,H,W) iota/select work.
    proj_y = jnp.max(m, axis=2)                       # (M, H)  > 0 where row has mask pixels
    proj_x = jnp.max(m, axis=1)                       # (M, W)
    row_sum = jnp.sum(m, axis=2)                      # (M, H)
    total = jnp.sum(row_sum, axis=1)                  # (M,)  matches reference sum == 0 test

    yi = lax.broadcasted_iota(jnp.int32, (Mm, H), 1)
    xi = lax.broadcasted_iota(jnp.int32, (Mm, W), 1)
    big = jnp.int32(2 ** 30)
    pos_y = proj_y > 0
    pos_x = proj_x > 0
    y_min = jnp.min(jnp.where(pos_y, yi, big), axis=1)
    y_max = jnp.max(jnp.where(pos_y, yi, -big), axis=1)
    x_min = jnp.min(jnp.where(pos_x, xi, big), axis=1)
    x_max = jnp.max(jnp.where(pos_x, xi, -big), axis=1)
    empty = total == 0.0

    # Same clamps as the reference get_roi_boxes_from_masks.
    x_min = jnp.maximum(x_min, 0)
    y_min = jnp.maximum(y_min, 0)
    x_max = jnp.minimum(x_max + 1, W - 1)
    y_max = jnp.minimum(y_max + 1, H - 1)

    zero = jnp.zeros_like(x_min)
    x_min = jnp.where(empty, zero, x_min)
    y_min = jnp.where(empty, zero, y_min)
    x_max = jnp.where(empty, zero, x_max)
    y_max = jnp.where(empty, zero, y_max)

    box_ref[0, 0, :] = x_min.astype(jnp.float32)
    box_ref[0, 1, :] = y_min.astype(jnp.float32)
    box_ref[0, 2, :] = x_max.astype(jnp.float32)
    box_ref[0, 3, :] = y_max.astype(jnp.float32)


def _fused_kernel(img_ref, msk_ref, rybig_ref, rxt_ref, rep_ref, gmat_ref,
                  wyf_t_ref, wxf_ref, wym_ref, wxmt_ref, omask_ref, oemb_ref):
    # img_ref   : (1, C*Hi, Wi)   image n (channel rows stacked, reshaped in the wrapper)
    # msk_ref   : (1, M, Hm, Wm)  all masks of image n
    # rybig_ref : (C*S, C*Hi)     kron(I_C, Ry)  block-diagonal resize row weights
    # rxt_ref   : (Wi, S)         Rx^T resize column weights
    # rep_ref   : (C*S, S)        kron(ones(C,1), I_S)   (replicate A across channels)
    # gmat_ref  : (C, C*S)        kron(I_C, ones(1,S))   (per-channel group sum)
    # wyf_t_ref : (1, M, S, R)    feature roi_align row weights (transposed)
    # wxf_ref   : (1, M, R, S)    feature roi_align col weights
    # wym_ref   : (1, M, R, Hm)   mask-crop roi_align row weights
    # wxmt_ref  : (1, M, Wm, R)   mask-crop roi_align col weights (transposed)
    # omask_ref : (1, M, R, R)    cropped binary masks
    # oemb_ref  : (1, M, C)       embeddings (lane-dense, one slab per image)
    Mm = msk_ref.shape[1]

    # ---- fused F.interpolate(bilinear): feat[c] = Ry @ x[c] @ Rx^T for all c at once ----
    x2 = img_ref[0]                                                    # (C*Hi, Wi)
    u = jnp.dot(x2, rxt_ref[...], preferred_element_type=jnp.float32)  # (C*Hi, S)
    f_stack = jnp.dot(rybig_ref[...], u,
                      preferred_element_type=jnp.float32)              # (C*S, S) = feat[c,h,:] rows
    # TODO(synk): for large C the kron(I_C, Ry) trick scales as C^2; a channels-last
    # layout with C-tiling would be used instead for big backbones.

    rep = rep_ref[...]                                                 # (C*S, S)
    gmat = gmat_ref[...]                                               # (C, C*S)

    for m in range(Mm):                               # M is small & static -> unrolled
        msk_m = msk_ref[0, m]                         # (Hm, Wm)

        # crop_roi_masks: roi_align(mask, aligned=True, sampling_ratio=0) > 0
        mc = jnp.dot(jnp.dot(wym_ref[0, m], msk_m, preferred_element_type=jnp.float32),
                     wxmt_ref[0, m], preferred_element_type=jnp.float32)   # (R, R)
        mbin = (mc > 0).astype(jnp.float32)
        omask_ref[0, m] = mbin

        inv = 1.0 / jnp.maximum(jnp.sum(mbin), 1e-6)

        # masked average pool fused with the feature roi_align (sampling_ratio=1):
        #   emb[c] = sum_{ij} mbin[ij] * (WyF feat[c] WxF^T)[ij] / msum
        #          = sum_{hw} feat[c,h,w] * (WyF^T mbin WxF)[h,w] / msum
        a_m = jnp.dot(jnp.dot(wyf_t_ref[0, m], mbin, preferred_element_type=jnp.float32),
                      wxf_ref[0, m], preferred_element_type=jnp.float32)    # (S, S)
        a_rep = jnp.dot(rep, a_m, preferred_element_type=jnp.float32)       # (C*S, S)
        contrib = jnp.dot(gmat, f_stack * a_rep,
                          preferred_element_type=jnp.float32)               # (C, S)
        oemb_ref[0, m, :] = jnp.sum(contrib, axis=1) * inv


# ========================= plain-JAX weight builders ==========================

def _resize_weights(out_size, in_size):
    # F.interpolate bilinear, align_corners=False
    i = jnp.arange(out_size, dtype=jnp.float32)
    scale = in_size / out_size
    src = jnp.maximum((i + 0.5) * scale - 0.5, 0.0)
    i0 = jnp.floor(src).astype(jnp.int32)
    i0 = jnp.minimum(i0, in_size - 1)
    i1 = jnp.minimum(i0 + 1, in_size - 1)
    w1 = src - i0.astype(jnp.float32)
    w0 = 1.0 - w1
    idx = jnp.arange(in_size)
    w = w0[:, None] * (i0[:, None] == idx) + w1[:, None] * (i1[:, None] == idx)
    return w.astype(jnp.float32)                                     # (out, in)


def _bilinear_weights(coords, size):
    # torchvision bilinear_interpolate boundary handling, separable 1-D weights.
    valid = (coords >= -1.0) & (coords <= size)
    c = jnp.maximum(coords, 0.0)
    low = jnp.floor(c).astype(jnp.int32)
    at_end = low >= size - 1
    low = jnp.minimum(low, size - 1)
    high = jnp.where(at_end, size - 1, low + 1)
    c_eff = jnp.where(at_end, low.astype(coords.dtype), c)
    l = c_eff - low.astype(coords.dtype)
    h = 1.0 - l
    idx = jnp.arange(size)
    w = h[..., None] * (low[..., None] == idx) + l[..., None] * (high[..., None] == idx)
    return jnp.where(valid[..., None], w, 0.0)


def _roi_weights_feats(lo, hi, R, size):
    # roi_align(aligned=False, sampling_ratio=1, spatial_scale=1)
    lo = lo.astype(jnp.float32)
    hi = hi.astype(jnp.float32)
    roi_len = jnp.maximum(hi - lo, 1.0)
    bin_sz = roi_len / R
    p = jnp.arange(R, dtype=jnp.float32)
    coords = lo[:, :, None] + (p[None, None, :] + 0.5) * bin_sz[:, :, None]   # (N, M, R)
    return _bilinear_weights(coords, size)                                    # (N, M, R, size)


def _roi_weights_masks(lo, hi, R, size):
    # roi_align(aligned=True, sampling_ratio=0, spatial_scale=1)
    lo = lo.astype(jnp.float32)
    hi = hi.astype(jnp.float32)
    roi_len = hi - lo
    start = lo - 0.5
    bin_sz = roi_len / R
    grid = jnp.ceil(roi_len / R)                  # adaptive samples per bin
    g = jnp.maximum(grid, 1.0)
    gmax = max(-(-size // R), 1)                  # static upper bound on grid
    p = jnp.arange(R, dtype=jnp.float32)
    s = jnp.arange(gmax, dtype=jnp.float32)
    coords = (start[:, :, None, None]
              + bin_sz[:, :, None, None] * p[None, None, :, None]
              + (s[None, None, None, :] + 0.5) * bin_sz[:, :, None, None]
              / g[:, :, None, None])              # (N, M, R, G)
    w = _bilinear_weights(coords, size)           # (N, M, R, G, size)
    sample_valid = (s[None, None, None, :] < grid[:, :, None, None]).astype(jnp.float32)
    w = w * sample_valid[..., None]
    return jnp.sum(w, axis=3) / g[:, :, None, None]                  # (N, M, R, size)


# ================================ forward pass ================================

def visual_token_embedding_forward(images, batch_masks, *, output_resolution,
                                   token_roi_resolution):
    N, C, Hi, Wi = images.shape
    _, M, Hm, Wm = batch_masks.shape
    S = output_resolution
    R = token_roi_resolution

    # TODO(synk): pretrained vision encoders (HF/VAE/timm backbones) have no
    # in-script equivalent; using RGBPixel-style identity encoder (features = pixels).
    feats_raw = images.astype(jnp.float32)
    masks_f = batch_masks.astype(jnp.float32)

    # ---- stage 1: get_roi_boxes_from_masks (Pallas, grid (N,), packed output) ----
    boxes_packed = pl.pallas_call(
        _boxes_kernel,
        out_shape=jax.ShapeDtypeStruct((N, 4, M), jnp.float32),
        grid=(N,),
        in_specs=[pl.BlockSpec((1, M, Hm, Wm), lambda n: (n, 0, 0, 0))],
        out_specs=pl.BlockSpec((1, 4, M), lambda n: (n, 0, 0)),
        compiler_params=pltpu.CompilerParams(dimension_semantics=("parallel",)),
    )(masks_f)
    xmin = boxes_packed[:, 0]                      # (N, M)
    ymin = boxes_packed[:, 1]
    xmax = boxes_packed[:, 2]
    ymax = boxes_packed[:, 3]
    roi_boxes = jnp.transpose(boxes_packed, (0, 2, 1))     # (N, M, 4)

    # ---- stage 2: separable roi_align interpolation weights (tiny, plain-JAX glue) ----
    wyf = _roi_weights_feats(ymin, ymax, R, S)     # (N, M, R, S)
    wxf = _roi_weights_feats(xmin, xmax, R, S)     # (N, M, R, S)
    wym = _roi_weights_masks(ymin, ymax, R, Hm)    # (N, M, R, Hm)
    wxm = _roi_weights_masks(xmin, xmax, R, Wm)    # (N, M, R, Wm)
    wyf_t = jnp.swapaxes(wyf, -1, -2)              # (N, M, S, R)
    wxm_t = jnp.swapaxes(wxm, -1, -2)              # (N, M, Wm, R)

    # Constant resize / grouping matrices shared by every grid step (fetched once).
    ry = _resize_weights(S, Hi)                    # (S, Hi)
    rx_t = _resize_weights(S, Wi).T                # (Wi, S)
    eye_c = jnp.eye(C, dtype=jnp.float32)
    ry_big = jnp.kron(eye_c, ry)                                       # (C*S, C*Hi)
    rep_mat = jnp.kron(jnp.ones((C, 1), jnp.float32),
                       jnp.eye(S, dtype=jnp.float32))                  # (C*S, S)
    gmat = jnp.kron(eye_c, jnp.ones((1, S), jnp.float32))              # (C, C*S)

    # Layout plumbing outside the kernel: stack channel rows so the kernel sees (C*Hi, Wi).
    images_2d = feats_raw.reshape(N, C * Hi, Wi)

    # ---- stage 3: fused resize + roi_align + crop_roi_masks + masked avg pool ----
    roi_masks, embeddings = pl.pallas_call(
        _fused_kernel,
        out_shape=(
            jax.ShapeDtypeStruct((N, M, R, R), jnp.float32),
            jax.ShapeDtypeStruct((N, M, C), jnp.float32),
        ),
        grid=(N,),
        in_specs=[
            pl.BlockSpec((1, C * Hi, Wi), lambda n: (n, 0, 0)),
            pl.BlockSpec((1, M, Hm, Wm), lambda n: (n, 0, 0, 0)),
            pl.BlockSpec((C * S, C * Hi), lambda n: (0, 0)),
            pl.BlockSpec((Wi, S), lambda n: (0, 0)),
            pl.BlockSpec((C * S, S), lambda n: (0, 0)),
            pl.BlockSpec((C, C * S), lambda n: (0, 0)),
            pl.BlockSpec((1, M, S, R), lambda n: (n, 0, 0, 0)),
            pl.BlockSpec((1, M, R, S), lambda n: (n, 0, 0, 0)),
            pl.BlockSpec((1, M, R, Hm), lambda n: (n, 0, 0, 0)),
            pl.BlockSpec((1, M, Wm, R), lambda n: (n, 0, 0, 0)),
        ],
        out_specs=(
            pl.BlockSpec((1, M, R, R), lambda n: (n, 0, 0, 0)),
            pl.BlockSpec((1, M, C), lambda n: (n, 0, 0)),
        ),
        compiler_params=pltpu.CompilerParams(dimension_semantics=("parallel",)),
    )(images_2d, masks_f, ry_big, rx_t, rep_mat, gmat, wyf_t, wxf, wym, wxm_t)

    # Reference returns roi_masks as float (0/1), boxes normalized by the mask resolution.
    return roi_boxes / float(Hm), roi_masks, embeddings


# =================================== demo =====================================

if __name__ == "__main__":
    N, C, H_IMG, W_IMG = 2, 4, 16, 16
    OUTPUT_RES = 12          # config.output_resolution (== mask resolution)
    M = 3                    # masks per image
    TOKEN_ROI_RES = 4        # config.token_roi_resolution

    key = jax.random.PRNGKey(0)
    k_img, k_msk = jax.random.split(key)
    images = jax.random.normal(k_img, (N, C, H_IMG, W_IMG), dtype=jnp.float32)
    masks = (jax.random.uniform(k_msk, (N, M, OUTPUT_RES, OUTPUT_RES)) > 0.6
             ).astype(jnp.float32)
    masks = masks.at[1, 2].set(0.0)    # exercise the empty-mask path

    fwd = jax.jit(lambda im, mk: visual_token_embedding_forward(
        im, mk, output_resolution=OUTPUT_RES,
        token_roi_resolution=TOKEN_ROI_RES))

    roi_boxes, roi_masks, embeddings = fwd(images, masks)
    jax.block_until_ready((roi_boxes, roi_masks, embeddings))

    assert roi_boxes.shape == (N, M, 4)
    assert roi_masks.shape == (N, M, TOKEN_ROI_RES, TOKEN_ROI_RES)
    assert embeddings.shape == (N, M, C)
    print("KERNEL_OK")
</pallas_src>

<mosaic_0001>
module attributes {stable_mosaic.version = 11 : i64} {
  func.func @_boxes_kernel(%arg0: i32, %arg1: memref<1x3x12x12xf32, #tpu.memory_space<vmem>>, %arg2: memref<1x4x3xf32, #tpu.memory_space<vmem>>) attributes {dimension_semantics = [#tpu.dimension_semantics<parallel>], iteration_bounds = array<i64: 2>, scalar_prefetch = 0 : i64, scratch_operands = 0 : i64, tpu.core_type = #tpu.core_type<tc>, window_params = [{transform_indices = @transform_0, window_bounds = array<i64: 1, 3, 12, 12>}, {transform_indices = @transform_1, window_bounds = array<i64: 1, 4, 3>}]} {
    %c0 = arith.constant 0 : index
    %c0_0 = arith.constant 0 : index
    %c0_1 = arith.constant 0 : index
    %c0_2 = arith.constant 0 : index
    %0 = vector.load %arg1[%c0, %c0_0, %c0_1, %c0_2] : memref<1x3x12x12xf32, #tpu.memory_space<vmem>>, vector<1x3x12x12xf32>
    %1 = vector.shape_cast %0 : vector<1x3x12x12xf32> to vector<3x12x12xf32>
    %cst = arith.constant dense<0xFF800000> : vector<3x12xf32>
    %2 = vector.multi_reduction <maximumf>, %1, %cst [2] : vector<3x12x12xf32> to vector<3x12xf32>
    %cst_3 = arith.constant dense<0xFF800000> : vector<3x12xf32>
    %3 = vector.multi_reduction <maximumf>, %1, %cst_3 [1] : vector<3x12x12xf32> to vector<3x12xf32>
    %cst_4 = arith.constant dense<0.000000e+00> : vector<3x12xf32>
    %4 = vector.multi_reduction <add>, %1, %cst_4 [2] : vector<3x12x12xf32> to vector<3x12xf32>
    %cst_5 = arith.constant dense<0.000000e+00> : vector<3xf32>
    %5 = vector.multi_reduction <add>, %4, %cst_5 [1] : vector<3x12xf32> to vector<3xf32>
    %6 = tpu.iota {dimensions = array<i32: 1>} : vector<3x12xi32>
    %7 = tpu.iota {dimensions = array<i32: 1>} : vector<3x12xi32>
    %cst_6 = arith.constant 0.000000e+00 : f32
    %8 = vector.broadcast %cst_6 : f32 to vector<3x12xf32>
    %9 = arith.cmpf ogt, %2, %8 : vector<3x12xf32>
    %cst_7 = arith.constant 0.000000e+00 : f32
    %10 = vector.broadcast %cst_7 : f32 to vector<3x12xf32>
    %11 = arith.cmpf ogt, %3, %10 : vector<3x12xf32>
    %c1073741824_i32 = arith.constant 1073741824 : i32
    %12 = vector.broadcast %c1073741824_i32 : i32 to vector<3x12xi32>
    %13 = arith.select %9, %6, %12 : vector<3x12xi1>, vector<3x12xi32>
    %cst_8 = arith.constant dense<2147483647> : vector<3xi32>
    %14 = vector.multi_reduction <minsi>, %13, %cst_8 [1] : vector<3x12xi32> to vector<3xi32>
    %c0_i32 = arith.constant 0 : i32
    %c1073741824_i32_9 = arith.constant 1073741824 : i32
    %15 = arith.subi %c0_i32, %c1073741824_i32_9 : i32
    %16 = vector.broadcast %15 : i32 to vector<3x12xi32>
    %17 = arith.select %9, %6, %16 : vector<3x12xi1>, vector<3x12xi32>
    %cst_10 = arith.constant dense<-2147483648> : vector<3xi32>
    %18 = vector.multi_reduction <maxsi>, %17, %cst_10 [1] : vector<3x12xi32> to vector<3xi32>
    %c1073741824_i32_11 = arith.constant 1073741824 : i32
    %19 = vector.broadcast %c1073741824_i32_11 : i32 to vector<3x12xi32>
    %20 = arith.select %11, %7, %19 : vector<3x12xi1>, vector<3x12xi32>
    %cst_12 = arith.constant dense<2147483647> : vector<3xi32>
    %21 = vector.multi_reduction <minsi>, %20, %cst_12 [1] : vector<3x12xi32> to vector<3xi32>
    %c0_i32_13 = arith.constant 0 : i32
    %c1073741824_i32_14 = arith.constant 1073741824 : i32
    %22 = arith.subi %c0_i32_13, %c1073741824_i32_14 : i32
    %23 = vector.broadcast %22 : i32 to vector<3x12xi32>
    %24 = arith.select %11, %7, %23 : vector<3x12xi1>, vector<3x12xi32>
    %cst_15 = arith.constant dense<-2147483648> : vector<3xi32>
    %25 = vector.multi_reduction <maxsi>, %24, %cst_15 [1] : vector<3x12xi32> to vector<3xi32>
    %cst_16 = arith.constant 0.000000e+00 : f32
    %26 = vector.broadcast %cst_16 : f32 to vector<3xf32>
    %27 = arith.cmpf oeq, %5, %26 : vector<3xf32>
    %c0_i32_17 = arith.constant 0 : i32
    %28 = vector.broadcast %c0_i32_17 : i32 to vector<3xi32>
    %29 = arith.maxsi %21, %28 : vector<3xi32>
    %c0_i32_18 = arith.constant 0 : i32
    %30 = vector.broadcast %c0_i32_18 : i32 to vector<3xi32>
    %31 = arith.maxsi %14, %30 : vector<3xi32>
    %c1_i32 = arith.constant 1 : i32
    %32 = vector.broadcast %c1_i32 : i32 to vector<3xi32>
    %33 = arith.addi %25, %32 : vector<3xi32>
    %c11_i32 = arith.constant 11 : i32
    %34 = vector.broadcast %c11_i32 : i32 to vector<3xi32>
    %35 = arith.minsi %33, %34 : vector<3xi32>
    %c1_i32_19 = arith.constant 1 : i32
    %36 = vector.broadcast %c1_i32_19 : i32 to vector<3xi32>
    %37 = arith.addi %18, %36 : vector<3xi32>
    %c11_i32_20 = arith.constant 11 : i32
    %38 = vector.broadcast %c11_i32_20 : i32 to vector<3xi32>
    %39 = arith.minsi %37, %38 : vector<3xi32>
    %c0_i32_21 = arith.constant 0 : i32
    %40 = vector.broadcast %c0_i32_21 : i32 to vector<3xi32>
    %41 = arith.select %27, %40, %29 : vector<3xi1>, vector<3xi32>
    %42 = arith.select %27, %40, %31 : vector<3xi1>, vector<3xi32>
    %43 = arith.select %27, %40, %35 : vector<3xi1>, vector<3xi32>
    %44 = arith.select %27, %40, %39 : vector<3xi1>, vector<3xi32>
    %45 = arith.sitofp %41 : vector<3xi32> to vector<3xf32>
    %c0_22 = arith.constant 0 : index
    %c0_23 = arith.constant 0 : index
    %c0_24 = arith.constant 0 : index
    %46 = vector.load %arg2[%c0_22, %c0_23, %c0_24] : memref<1x4x3xf32, #tpu.memory_space<vmem>>, vector<1x1x3xf32>
    %47 = vector.shape_cast %46 : vector<1x1x3xf32> to vector<3xf32>
    %48 = vector.shape_cast %45 : vector<3xf32> to vector<1x1x3xf32>
    tpu.vector_store %arg2[%c0_22, %c0_23, %c0_24], %48 {strides = array<i32>} : memref<1x4x3xf32, #tpu.memory_space<vmem>>, vector<1x1x3xf32>,
    %49 = arith.sitofp %42 : vector<3xi32> to vector<3xf32>
    %c0_25 = arith.constant 0 : index
    %c1 = arith.constant 1 : index
    %c0_26 = arith.constant 0 : index
    %50 = vector.load %arg2[%c0_25, %c1, %c0_26] : memref<1x4x3xf32, #tpu.memory_space<vmem>>, vector<1x1x3xf32>
    %51 = vector.shape_cast %50 : vector<1x1x3xf32> to vector<3xf32>
    %52 = vector.shape_cast %49 : vector<3xf32> to vector<1x1x3xf32>
    tpu.vector_store %arg2[%c0_25, %c1, %c0_26], %52 {strides = array<i32>} : memref<1x4x3xf32, #tpu.memory_space<vmem>>, vector<1x1x3xf32>,
    %53 = arith.sitofp %43 : vector<3xi32> to vector<3xf32>
    %c0_27 = arith.constant 0 : index
    %c2 = arith.constant 2 : index
    %c0_28 = arith.constant 0 : index
    %54 = vector.load %arg2[%c0_27, %c2, %c0_28] : memref<1x4x3xf32, #tpu.memory_space<vmem>>, vector<1x1x3xf32>
    %55 = vector.shape_cast %54 : vector<1x1x3xf32> to vector<3xf32>
    %56 = vector.shape_cast %53 : vector<3xf32> to vector<1x1x3xf32>
    tpu.vector_store %arg2[%c0_27, %c2, %c0_28], %56 {strides = array<i32>} : memref<1x4x3xf32, #tpu.memory_space<vmem>>, vector<1x1x3xf32>,
    %57 = arith.sitofp %44 : vector<3xi32> to vector<3xf32>
    %c0_29 = arith.constant 0 : index
    %c3 = arith.constant 3 : index
    %c0_30 = arith.constant 0 : index
    %58 = vector.load %arg2[%c0_29, %c3, %c0_30] : memref<1x4x3xf32, #tpu.memory_space<vmem>>, vector<1x1x3xf32>
    %59 = vector.shape_cast %58 : vector<1x1x3xf32> to vector<3xf32>
    %60 = vector.shape_cast %57 : vector<3xf32> to vector<1x1x3xf32>
    tpu.vector_store %arg2[%c0_29, %c3, %c0_30], %60 {strides = array<i32>} : memref<1x4x3xf32, #tpu.memory_space<vmem>>, vector<1x1x3xf32>,
    return
  }
  func.func @transform_0(%arg0: i32) -> (i32, i32, i32, i32) {
    %c0_i32 = arith.constant 0 : i32
    %c0_i32_0 = arith.constant 0 : i32
    %c0_i32_1 = arith.constant 0 : i32
    %c0_i32_2 = arith.constant 0 : i32
    return %arg0, %c0_i32, %c0_i32_0, %c0_i32_1 : i32, i32, i32, i32
  }
  func.func @transform_1(%arg0: i32) -> (i32, i32, i32) {
    %c0_i32 = arith.constant 0 : i32
    %c0_i32_0 = arith.constant 0 : i32
    %c0_i32_1 = arith.constant 0 : i32
    return %arg0, %c0_i32, %c0_i32_0 : i32, i32, i32
  }
}

module attributes {stable_mosaic.version = 11 : i64} {
  func.func @_fused_kernel(%arg0: i32, %arg1: memref<1x64x16xf32, #tpu.memory_space<vmem>>, %arg2: memref<1x3x12x12xf32, #tpu.memory_space<vmem>>, %arg3: memref<48x64xf32, #tpu.memory_space<vmem>>, %arg4: memref<16x12xf32, #tpu.memory_space<vmem>>, %arg5: memref<48x12xf32, #tpu.memory_space<vmem>>, %arg6: memref<4x48xf32, #tpu.memory_space<vmem>>, %arg7: memref<1x3x12x4xf32, #tpu.memory_space<vmem>>, %arg8: memref<1x3x4x12xf32, #tpu.memory_space<vmem>>, %arg9: memref<1x3x4x12xf32, #tpu.memory_space<vmem>>, %arg10: memref<1x3x12x4xf32, #tpu.memory_space<vmem>>, %arg11: memref<1x3x4x4xf32, #tpu.memory_space<vmem>>, %arg12: memref<1x3x4xf32, #tpu.memory_space<vmem>>) attributes {dimension_semantics = [#tpu.dimension_semantics<parallel>], iteration_bounds = array<i64: 2>, scalar_prefetch = 0 : i64, scratch_operands = 0 : i64, tpu.core_type = #tpu.core_type<tc>, window_params = [{transform_indices = @transform_0, window_bounds = array<i64: 1, 64, 16>}, {transform_indices = @transform_1, window_bounds = array<i64: 1, 3, 12, 12>}, {pipeline_mode = #tpu.pipeline_mode<synchronous>, transform_indices = @transform_2, window_bounds = array<i64: 48, 64>}, {pipeline_mode = #tpu.pipeline_mode<synchronous>, transform_indices = @transform_3, window_bounds = array<i64: 16, 12>}, {pipeline_mode = #tpu.pipeline_mode<synchronous>, transform_indices = @transform_4, window_bounds = array<i64: 48, 12>}, {pipeline_mode = #tpu.pipeline_mode<synchronous>, transform_indices = @transform_5, window_bounds = array<i64: 4, 48>}, {transform_indices = @transform_6, window_bounds = array<i64: 1, 3, 12, 4>}, {transform_indices = @transform_7, window_bounds = array<i64: 1, 3, 4, 12>}, {transform_indices = @transform_8, window_bounds = array<i64: 1, 3, 4, 12>}, {transform_indices = @transform_9, window_bounds = array<i64: 1, 3, 12, 4>}, {transform_indices = @transform_10, window_bounds = array<i64: 1, 3, 4, 4>}, {transform_indices = @transform_11, window_bounds = array<i64: 1, 3, 4>}]} {
    %c0 = arith.constant 0 : index
    %c0_0 = arith.constant 0 : index
    %c0_1 = arith.constant 0 : index
    %0 = vector.load %arg1[%c0, %c0_0, %c0_1] : memref<1x64x16xf32, #tpu.memory_space<vmem>>, vector<1x64x16xf32>
    %1 = vector.shape_cast %0 : vector<1x64x16xf32> to vector<64x16xf32>
    %c0_2 = arith.constant 0 : index
    %c0_3 = arith.constant 0 : index
    %2 = vector.load %arg4[%c0_2, %c0_3] : memref<16x12xf32, #tpu.memory_space<vmem>>, vector<16x12xf32>
    %cst = arith.constant dense<0.000000e+00> : vector<64x12xf32>
    %3 = tpu.matmul %1, %2, %cst {dimension_numbers = #tpu.dot_dimension_numbers<[1], [0], [0], [1], [0, 0, 1, 1], [], []>} : vector<64x16xf32>, vector<16x12xf32>, vector<64x12xf32> -> vector<64x12xf32>
    %c0_4 = arith.constant 0 : index
    %c0_5 = arith.constant 0 : index
    %4 = vector.load %arg3[%c0_4, %c0_5] : memref<48x64xf32, #tpu.memory_space<vmem>>, vector<48x64xf32>
    %cst_6 = arith.constant dense<0.000000e+00> : vector<48x12xf32>
    %5 = tpu.matmul %4, %3, %cst_6 {dimension_numbers = #tpu.dot_dimension_numbers<[1], [0], [0], [1], [0, 0, 1, 1], [], []>} : vector<48x64xf32>, vector<64x12xf32>, vector<48x12xf32> -> vector<48x12xf32>
    %c0_7 = arith.constant 0 : index
    %c0_8 = arith.constant 0 : index
    %6 = vector.load %arg5[%c0_7, %c0_8] : memref<48x12xf32, #tpu.memory_space<vmem>>, vector<48x12xf32>
    %c0_9 = arith.constant 0 : index
    %c0_10 = arith.constant 0 : index
    %7 = vector.load %arg6[%c0_9, %c0_10] : memref<4x48xf32, #tpu.memory_space<vmem>>, vector<4x48xf32>
    %c0_11 = arith.constant 0 : index
    %c0_12 = arith.constant 0 : index
    %c0_13 = arith.constant 0 : index
    %c0_14 = arith.constant 0 : index
    %8 = vector.load %arg2[%c0_11, %c0_12, %c0_13, %c0_14] : memref<1x3x12x12xf32, #tpu.memory_space<vmem>>, vector<1x1x12x12xf32>
    %9 = vector.shape_cast %8 : vector<1x1x12x12xf32> to vector<12x12xf32>
    %c0_15 = arith.constant 0 : index
    %c0_16 = arith.constant 0 : index
    %c0_17 = arith.constant 0 : index
    %c0_18 = arith.constant 0 : index
    %10 = vector.load %arg9[%c0_15, %c0_16, %c0_17, %c0_18] : memref<1x3x4x12xf32, #tpu.memory_space<vmem>>, vector<1x1x4x12xf32>
    %11 = vector.shape_cast %10 : vector<1x1x4x12xf32> to vector<4x12xf32>
    %cst_19 = arith.constant dense<0.000000e+00> : vector<4x12xf32>
    %12 = tpu.matmul %11, %9, %cst_19 {dimension_numbers = #tpu.dot_dimension_numbers<[1], [0], [0], [1], [0, 0, 1, 1], [], []>} : vector<4x12xf32>, vector<12x12xf32>, vector<4x12xf32> -> vector<4x12xf32>
    %c0_20 = arith.constant 0 : index
    %c0_21 = arith.constant 0 : index
    %c0_22 = arith.constant 0 : index
    %c0_23 = arith.constant 0 : index
    %13 = vector.load %arg10[%c0_20, %c0_21, %c0_22, %c0_23] : memref<1x3x12x4xf32, #tpu.memory_space<vmem>>, vector<1x1x12x4xf32>
    %14 = vector.shape_cast %13 : vector<1x1x12x4xf32> to vector<12x4xf32>
    %cst_24 = arith.constant dense<0.000000e+00> : vector<4x4xf32>
    %15 = tpu.matmul %12, %14, %cst_24 {dimension_numbers = #tpu.dot_dimension_numbers<[1], [0], [0], [1], [0, 0, 1, 1], [], []>} : vector<4x12xf32>, vector<12x4xf32>, vector<4x4xf32> -> vector<4x4xf32>
    %cst_25 = arith.constant 0.000000e+00 : f32
    %16 = vector.broadcast %cst_25 : f32 to vector<4x4xf32>
    %17 = arith.cmpf ogt, %15, %16 : vector<4x4xf32>
    %18 = arith.extui %17 : vector<4x4xi1> to vector<4x4xi32>
    %19 = arith.sitofp %18 : vector<4x4xi32> to vector<4x4xf32>
    %c0_26 = arith.constant 0 : index
    %c0_27 = arith.constant 0 : index
    %c0_28 = arith.constant 0 : index
    %c0_29 = arith.constant 0 : index
    %20 = vector.load %arg11[%c0_26, %c0_27, %c0_28, %c0_29] : memref<1x3x4x4xf32, #tpu.memory_space<vmem>>, vector<1x1x4x4xf32>
    %21 = vector.shape_cast %20 : vector<1x1x4x4xf32> to vector<4x4xf32>
    %22 = vector.shape_cast %19 : vector<4x4xf32> to vector<1x1x4x4xf32>
    tpu.vector_store %arg11[%c0_26, %c0_27, %c0_28, %c0_29], %22 {strides = array<i32>} : memref<1x3x4x4xf32, #tpu.memory_space<vmem>>, vector<1x1x4x4xf32>,
    %23 = vector.shape_cast %19 : vector<4x4xf32> to vector<1x4x4xf32>
    %cst_30 = arith.constant dense<0.000000e+00> : vector<1xf32>
    %24 = vector.multi_reduction <add>, %23, %cst_30 [1, 2] : vector<1x4x4xf32> to vector<1xf32>
    %25 = vector.shape_cast %24 : vector<1xf32> to vector<1x1x1xf32>
    %26 = vector.extract %25[0, 0, 0] : f32 from vector<1x1x1xf32>
    %cst_31 = arith.constant 9.99999997E-7 : f32
    %27 = arith.maximumf %26, %cst_31 : f32
    %cst_32 = arith.constant 1.000000e+00 : f32
    %28 = arith.divf %cst_32, %27 : f32
    %c0_33 = arith.constant 0 : index
    %c0_34 = arith.constant 0 : index
    %c0_35 = arith.constant 0 : index
    %c0_36 = arith.constant 0 : index
    %29 = vector.load %arg7[%c0_33, %c0_34, %c0_35, %c0_36] : memref<1x3x12x4xf32, #tpu.memory_space<vmem>>, vector<1x1x12x4xf32>
    %30 = vector.shape_cast %29 : vector<1x1x12x4xf32> to vector<12x4xf32>
    %cst_37 = arith.constant dense<0.000000e+00> : vector<12x4xf32>
    %31 = tpu.matmul %30, %19, %cst_37 {dimension_numbers = #tpu.dot_dimension_numbers<[1], [0], [0], [1], [0, 0, 1, 1], [], []>} : vector<12x4xf32>, vector<4x4xf32>, vector<12x4xf32> -> vector<12x4xf32>
    %c0_38 = arith.constant 0 : index
    %c0_39 = arith.constant 0 : index
    %c0_40 = arith.constant 0 : index
    %c0_41 = arith.constant 0 : index
    %32 = vector.load %arg8[%c0_38, %c0_39, %c0_40, %c0_41] : memref<1x3x4x12xf32, #tpu.memory_space<vmem>>, vector<1x1x4x12xf32>
    %33 = vector.shape_cast %32 : vector<1x1x4x12xf32> to vector<4x12xf32>
    %cst_42 = arith.constant dense<0.000000e+00> : vector<12x12xf32>
    %34 = tpu.matmul %31, %33, %cst_42 {dimension_numbers = #tpu.dot_dimension_numbers<[1], [0], [0], [1], [0, 0, 1, 1], [], []>} : vector<12x4xf32>, vector<4x12xf32>, vector<12x12xf32> -> vector<12x12xf32>
    %cst_43 = arith.constant dense<0.000000e+00> : vector<48x12xf32>
    %35 = tpu.matmul %6, %34, %cst_43 {dimension_numbers = #tpu.dot_dimension_numbers<[1], [0], [0], [1], [0, 0, 1, 1], [], []>} : vector<48x12xf32>, vector<12x12xf32>, vector<48x12xf32> -> vector<48x12xf32>
    %36 = arith.mulf %5, %35 : vector<48x12xf32>
    %cst_44 = arith.constant dense<0.000000e+00> : vector<4x12xf32>
    %37 = tpu.matmul %7, %36, %cst_44 {dimension_numbers = #tpu.dot_dimension_numbers<[1], [0], [0], [1], [0, 0, 1, 1], [], []>} : vector<4x48xf32>, vector<48x12xf32>, vector<4x12xf32> -> vector<4x12xf32>
    %cst_45 = arith.constant dense<0.000000e+00> : vector<4xf32>
    %38 = vector.multi_reduction <add>, %37, %cst_45 [1] : vector<4x12xf32> to vector<4xf32>
    %39 = vector.broadcast %28 : f32 to vector<4xf32>
    %40 = arith.mulf %38, %39 : vector<4xf32>
    %c0_46 = arith.constant 0 : index
    %c0_47 = arith.constant 0 : index
    %c0_48 = arith.constant 0 : index
    %41 = vector.load %arg12[%c0_46, %c0_47, %c0_48] : memref<1x3x4xf32, #tpu.memory_space<vmem>>, vector<1x1x4xf32>
    %42 = vector.shape_cast %41 : vector<1x1x4xf32> to vector<4xf32>
    %43 = vector.shape_cast %40 : vector<4xf32> to vector<1x1x4xf32>
    tpu.vector_store %arg12[%c0_46, %c0_47, %c0_48], %43 {strides = array<i32>} : memref<1x3x4xf32, #tpu.memory_space<vmem>>, vector<1x1x4xf32>,
    %c0_49 = arith.constant 0 : index
    %c1 = arith.constant 1 : index
    %c0_50 = arith.constant 0 : index
    %c0_51 = arith.constant 0 : index
    %44 = vector.load %arg2[%c0_49, %c1, %c0_50, %c0_51] : memref<1x3x12x12xf32, #tpu.memory_space<vmem>>, vector<1x1x12x12xf32>
    %45 = vector.shape_cast %44 : vector<1x1x12x12xf32> to vector<12x12xf32>
    %c0_52 = arith.constant 0 : index
    %c1_53 = arith.constant 1 : index
    %c0_54 = arith.constant 0 : index
    %c0_55 = arith.constant 0 : index
    %46 = vector.load %arg9[%c0_52, %c1_53, %c0_54, %c0_55] : memref<1x3x4x12xf32, #tpu.memory_space<vmem>>, vector<1x1x4x12xf32>
    %47 = vector.shape_cast %46 : vector<1x1x4x12xf32> to vector<4x12xf32>
    %cst_56 = arith.constant dense<0.000000e+00> : vector<4x12xf32>
    %48 = tpu.matmul %47, %45, %cst_56 {dimension_numbers = #tpu.dot_dimension_numbers<[1], [0], [0], [1], [0, 0, 1, 1], [], []>} : vector<4x12xf32>, vector<12x12xf32>, vector<4x12xf32> -> vector<4x12xf32>
    %c0_57 = arith.constant 0 : index
    %c1_58 = arith.constant 1 : index
    %c0_59 = arith.constant 0 : index
    %c0_60 = arith.constant 0 : index
    %49 = vector.load %arg10[%c0_57, %c1_58, %c0_59, %c0_60] : memref<1x3x12x4xf32, #tpu.memory_space<vmem>>, vector<1x1x12x4xf32>
    %50 = vector.shape_cast %49 : vector<1x1x12x4xf32> to vector<12x4xf32>
    %cst_61 = arith.constant dense<0.000000e+00> : vector<4x4xf32>
    %51 = tpu.matmul %48, %50, %cst_61 {dimension_numbers = #tpu.dot_dimension_numbers<[1], [0], [0], [1], [0, 0, 1, 1], [], []>} : vector<4x12xf32>, vector<12x4xf32>, vector<4x4xf32> -> vector<4x4xf32>
    %cst_62 = arith.constant 0.000000e+00 : f32
    %52 = vector.broadcast %cst_62 : f32 to vector<4x4xf32>
    %53 = arith.cmpf ogt, %51, %52 : vector<4x4xf32>
    %54 = arith.extui %53 : vector<4x4xi1> to vector<4x4xi32>
    %55 = arith.sitofp %54 : vector<4x4xi32> to vector<4x4xf32>
    %c0_63 = arith.constant 0 : index
    %c1_64 = arith.constant 1 : index
    %c0_65 = arith.constant 0 : index
    %c0_66 = arith.constant 0 : index
    %56 = vector.load %arg11[%c0_63, %c1_64, %c0_65, %c0_66] : memref<1x3x4x4xf32, #tpu.memory_space<vmem>>, vector<1x1x4x4xf32>
    %57 = vector.shape_cast %56 : vector<1x1x4x4xf32> to vector<4x4xf32>
    %58 = vector.shape_cast %55 : vector<4x4xf32> to vector<1x1x4x4xf32>
    tpu.vector_store %arg11[%c0_63, %c1_64, %c0_65, %c0_66], %58 {strides = array<i32>} : memref<1x3x4x4xf32, #tpu.memory_space<vmem>>, vector<1x1x4x4xf32>,
    %59 = vector.shape_cast %55 : vector<4x4xf32> to vector<1x4x4xf32>
    %cst_67 = arith.constant dense<0.000000e+00> : vector<1xf32>
    %60 = vector.multi_reduction <add>, %59, %cst_67 [1, 2] : vector<1x4x4xf32> to vector<1xf32>
    %61 = vector.shape_cast %60 : vector<1xf32> to vector<1x1x1xf32>
    %62 = vector.extract %61[0, 0, 0] : f32 from vector<1x1x1xf32>
    %cst_68 = arith.constant 9.99999997E-7 : f32
    %63 = arith.maximumf %62, %cst_68 : f32
    %cst_69 = arith.constant 1.000000e+00 : f32
    %64 = arith.divf %cst_69, %63 : f32
    %c0_70 = arith.constant 0 : index
    %c1_71 = arith.constant 1 : index
    %c0_72 = arith.constant 0 : index
    %c0_73 = arith.constant 0 : index
    %65 = vector.load %arg7[%c0_70, %c1_71, %c0_72, %c0_73] : memref<1x3x12x4xf32, #tpu.memory_space<vmem>>, vector<1x1x12x4xf32>
    %66 = vector.shape_cast %65 : vector<1x1x12x4xf32> to vector<12x4xf32>
    %cst_74 = arith.constant dense<0.000000e+00> : vector<12x4xf32>
    %67 = tpu.matmul %66, %55, %cst_74 {dimension_numbers = #tpu.dot_dimension_numbers<[1], [0], [0], [1], [0, 0, 1, 1], [], []>} : vector<12x4xf32>, vector<4x4xf32>, vector<12x4xf32> -> vector<12x4xf32>
    %c0_75 = arith.constant 0 : index
    %c1_76 = arith.constant 1 : index
    %c0_77 = arith.constant 0 : index
    %c0_78 = arith.constant 0 : index
    %68 = vector.load %arg8[%c0_75, %c1_76, %c0_77, %c0_78] : memref<1x3x4x12xf32, #tpu.memory_space<vmem>>, vector<1x1x4x12xf32>
    %69 = vector.shape_cast %68 : vector<1x1x4x12xf32> to vector<4x12xf32>
    %cst_79 = arith.constant dense<0.000000e+00> : vector<12x12xf32>
    %70 = tpu.matmul %67, %69, %cst_79 {dimension_numbers = #tpu.dot_dimension_numbers<[1], [0], [0], [1], [0, 0, 1, 1], [], []>} : vector<12x4xf32>, vector<4x12xf32>, vector<12x12xf32> -> vector<12x12xf32>
    %cst_80 = arith.constant dense<0.000000e+00> : vector<48x12xf32>
    %71 = tpu.matmul %6, %70, %cst_80 {dimension_numbers = #tpu.dot_dimension_numbers<[1], [0], [0], [1], [0, 0, 1, 1], [], []>} : vector<48x12xf32>, vector<12x12xf32>, vector<48x12xf32> -> vector<48x12xf32>
    %72 = arith.mulf %5, %71 : vector<48x12xf32>
    %cst_81 = arith.constant dense<0.000000e+00> : vector<4x12xf32>
    %73 = tpu.matmul %7, %72, %cst_81 {dimension_numbers = #tpu.dot_dimension_numbers<[1], [0], [0], [1], [0, 0, 1, 1], [], []>} : vector<4x48xf32>, vector<48x12xf32>, vector<4x12xf32> -> vector<4x12xf32>
    %cst_82 = arith.constant dense<0.000000e+00> : vector<4xf32>
    %74 = vector.multi_reduction <add>, %73, %cst_82 [1] : vector<4x12xf32> to vector<4xf32>
    %75 = vector.broadcast %64 : f32 to vector<4xf32>
    %76 = arith.mulf %74, %75 : vector<4xf32>
    %c0_83 = arith.constant 0 : index
    %c1_84 = arith.constant 1 : index
    %c0_85 = arith.constant 0 : index
    %77 = vector.load %arg12[%c0_83, %c1_84, %c0_85] : memref<1x3x4xf32, #tpu.memory_space<vmem>>, vector<1x1x4xf32>
    %78 = vector.shape_cast %77 : vector<1x1x4xf32> to vector<4xf32>
    %79 = vector.shape_cast %76 : vector<4xf32> to vector<1x1x4xf32>
    tpu.vector_store %arg12[%c0_83, %c1_84, %c0_85], %79 {strides = array<i32>} : memref<1x3x4xf32, #tpu.memory_space<vmem>>, vector<1x1x4xf32>,
    %c0_86 = arith.constant 0 : index
    %c2 = arith.constant 2 : index
    %c0_87 = arith.constant 0 : index
    %c0_88 = arith.constant 0 : index
    %80 = vector.load %arg2[%c0_86, %c2, %c0_87, %c0_88] : memref<1x3x12x12xf32, #tpu.memory_space<vmem>>, vector<1x1x12x12xf32>
    %81 = vector.shape_cast %80 : vector<1x1x12x12xf32> to vector<12x12xf32>
    %c0_89 = arith.constant 0 : index
    %c2_90 = arith.constant 2 : index
    %c0_91 = arith.constant 0 : index
    %c0_92 = arith.constant 0 : index
    %82 = vector.load %arg9[%c0_89, %c2_90, %c0_91, %c0_92] : memref<1x3x4x12xf32, #tpu.memory_space<vmem>>, vector<1x1x4x12xf32>
    %83 = vector.shape_cast %82 : vector<1x1x4x12xf32> to vector<4x12xf32>
    %cst_93 = arith.constant dense<0.000000e+00> : vector<4x12xf32>
    %84 = tpu.matmul %83, %81, %cst_93 {dimension_numbers = #tpu.dot_dimension_numbers<[1], [0], [0], [1], [0, 0, 1, 1], [], []>} : vector<4x12xf32>, vector<12x12xf32>, vector<4x12xf32> -> vector<4x12xf32>
    %c0_94 = arith.constant 0 : index
    %c2_95 = arith.constant 2 : index
    %c0_96 = arith.constant 0 : index
    %c0_97 = arith.constant 0 : index
    %85 = vector.load %arg10[%c0_94, %c2_95, %c0_96, %c0_97] : memref<1x3x12x4xf32, #tpu.memory_space<vmem>>, vector<1x1x12x4xf32>
    %86 = vector.shape_cast %85 : vector<1x1x12x4xf32> to vector<12x4xf32>
    %cst_98 = arith.constant dense<0.000000e+00> : vector<4x4xf32>
    %87 = tpu.matmul %84, %86, %cst_98 {dimension_numbers = #tpu.dot_dimension_numbers<[1], [0], [0], [1], [0, 0, 1, 1], [], []>} : vector<4x12xf32>, vector<12x4xf32>, vector<4x4xf32> -> vector<4x4xf32>
    %cst_99 = arith.constant 0.000000e+00 : f32
    %88 = vector.broadcast %cst_99 : f32 to vector<4x4xf32>
    %89 = arith.cmpf ogt, %87, %88 : vector<4x4xf32>
    %90 = arith.extui %89 : vector<4x4xi1> to vector<4x4xi32>
    %91 = arith.sitofp %90 : vector<4x4xi32> to vector<4x4xf32>
    %c0_100 = arith.constant 0 : index
    %c2_101 = arith.constant 2 : index
    %c0_102 = arith.constant 0 : index
    %c0_103 = arith.constant 0 : index
    %92 = vector.load %arg11[%c0_100, %c2_101, %c0_102, %c0_103] : memref<1x3x4x4xf32, #tpu.memory_space<vmem>>, vector<1x1x4x4xf32>
    %93 = vector.shape_cast %92 : vector<1x1x4x4xf32> to vector<4x4xf32>
    %94 = vector.shape_cast %91 : vector<4x4xf32> to vector<1x1x4x4xf32>
    tpu.vector_store %arg11[%c0_100, %c2_101, %c0_102, %c0_103], %94 {strides = array<i32>} : memref<1x3x4x4xf32, #tpu.memory_space<vmem>>, vector<1x1x4x4xf32>,
    %95 = vector.shape_cast %91 : vector<4x4xf32> to vector<1x4x4xf32>
    %cst_104 = arith.constant dense<0.000000e+00> : vector<1xf32>
    %96 = vector.multi_reduction <add>, %95, %cst_104 [1, 2] : vector<1x4x4xf32> to vector<1xf32>
    %97 = vector.shape_cast %96 : vector<1xf32> to vector<1x1x1xf32>
    %98 = vector.extract %97[0, 0, 0] : f32 from vector<1x1x1xf32>
    %cst_105 = arith.constant 9.99999997E-7 : f32
    %99 = arith.maximumf %98, %cst_105 : f32
    %cst_106 = arith.constant 1.000000e+00 : f32
    %100 = arith.divf %cst_106, %99 : f32
    %c0_107 = arith.constant 0 : index
    %c2_108 = arith.constant 2 : index
    %c0_109 = arith.constant 0 : index
    %c0_110 = arith.constant 0 : index
    %101 = vector.load %arg7[%c0_107, %c2_108, %c0_109, %c0_110] : memref<1x3x12x4xf32, #tpu.memory_space<vmem>>, vector<1x1x12x4xf32>
    %102 = vector.shape_cast %101 : vector<1x1x12x4xf32> to vector<12x4xf32>
    %cst_111 = arith.constant dense<0.000000e+00> : vector<12x4xf32>
    %103 = tpu.matmul %102, %91, %cst_111 {dimension_numbers = #tpu.dot_dimension_numbers<[1], [0], [0], [1], [0, 0, 1, 1], [], []>} : vector<12x4xf32>, vector<4x4xf32>, vector<12x4xf32> -> vector<12x4xf32>
    %c0_112 = arith.constant 0 : index
    %c2_113 = arith.constant 2 : index
    %c0_114 = arith.constant 0 : index
    %c0_115 = arith.constant 0 : index
    %104 = vector.load %arg8[%c0_112, %c2_113, %c0_114, %c0_115] : memref<1x3x4x12xf32, #tpu.memory_space<vmem>>, vector<1x1x4x12xf32>
    %105 = vector.shape_cast %104 : vector<1x1x4x12xf32> to vector<4x12xf32>
    %cst_116 = arith.constant dense<0.000000e+00> : vector<12x12xf32>
    %106 = tpu.matmul %103, %105, %cst_116 {dimension_numbers = #tpu.dot_dimension_numbers<[1], [0], [0], [1], [0, 0, 1, 1], [], []>} : vector<12x4xf32>, vector<4x12xf32>, vector<12x12xf32> -> vector<12x12xf32>
    %cst_117 = arith.constant dense<0.000000e+00> : vector<48x12xf32>
    %107 = tpu.matmul %6, %106, %cst_117 {dimension_numbers = #tpu.dot_dimension_numbers<[1], [0], [0], [1], [0, 0, 1, 1], [], []>} : vector<48x12xf32>, vector<12x12xf32>, vector<48x12xf32> -> vector<48x12xf32>
    %108 = arith.mulf %5, %107 : vector<48x12xf32>
    %cst_118 = arith.constant dense<0.000000e+00> : vector<4x12xf32>
    %109 = tpu.matmul %7, %108, %cst_118 {dimension_numbers = #tpu.dot_dimension_numbers<[1], [0], [0], [1], [0, 0, 1, 1], [], []>} : vector<4x48xf32>, vector<48x12xf32>, vector<4x12xf32> -> vector<4x12xf32>
    %cst_119 = arith.constant dense<0.000000e+00> : vector<4xf32>
    %110 = vector.multi_reduction <add>, %109, %cst_119 [1] : vector<4x12xf32> to vector<4xf32>
    %111 = vector.broadcast %100 : f32 to vector<4xf32>
    %112 = arith.mulf %110, %111 : vector<4xf32>
    %c0_120 = arith.constant 0 : index
    %c2_121 = arith.constant 2 : index
    %c0_122 = arith.constant 0 : index
    %113 = vector.load %arg12[%c0_120, %c2_121, %c0_122] : memref<1x3x4xf32, #tpu.memory_space<vmem>>, vector<1x1x4xf32>
    %114 = vector.shape_cast %113 : vector<1x1x4xf32> to vector<4xf32>
    %115 = vector.shape_cast %112 : vector<4xf32> to vector<1x1x4xf32>
    tpu.vector_store %arg12[%c0_120, %c2_121, %c0_122], %115 {strides = array<i32>} : memref<1x3x4xf32, #tpu.memory_space<vmem>>, vector<1x1x4xf32>,
    return
  }
  func.func @transform_0(%arg0: i32) -> (i32, i32, i32) {
    %c0_i32 = arith.constant 0 : i32
    %c0_i32_0 = arith.constant 0 : i32
    %c0_i32_1 = arith.constant 0 : i32
    return %arg0, %c0_i32, %c0_i32_0 : i32, i32, i32
  }
  func.func @transform_1(%arg0: i32) -> (i32, i32, i32, i32) {
    %c0_i32 = arith.constant 0 : i32
    %c0_i32_0 = arith.constant 0 : i32
    %c0_i32_1 = arith.constant 0 : i32
    %c0_i32_2 = arith.constant 0 : i32
    return %arg0, %c0_i32, %c0_i32_0, %c0_i32_1 : i32, i32, i32, i32
  }
  func.func @transform_2(%arg0: i32) -> (i32, i32) {
    %c0_i32 = arith.constant 0 : i32
    %c0_i32_0 = arith.constant 0 : i32
    %c0_i32_1 = arith.constant 0 : i32
    return %c0_i32, %c0_i32_0 : i32, i32
  }
  func.func @transform_3(%arg0: i32) -> (i32, i32) {
    %c0_i32 = arith.constant 0 : i32
    %c0_i32_0 = arith.constant 0 : i32
    %c0_i32_1 = arith.constant 0 : i32
    return %c0_i32, %c0_i32_0 : i32, i32
  }
  func.func @transform_4(%arg0: i32) -> (i32, i32) {
    %c0_i32 = arith.constant 0 : i32
    %c0_i32_0 = arith.constant 0 : i32
    %c0_i32_1 = arith.constant 0 : i32
    return %c0_i32, %c0_i32_0 : i32, i32
  }
  func.func @transform_5(%arg0: i32) -> (i32, i32) {
    %c0_i32 = arith.constant 0 : i32
    %c0_i32_0 = arith.constant 0 : i32
    %c0_i32_1 = arith.constant 0 : i32
    return %c0_i32, %c0_i32_0 : i32, i32
  }
  func.func @transform_6(%arg0: i32) -> (i32, i32, i32, i32) {
    %c0_i32 = arith.constant 0 : i32
    %c0_i32_0 = arith.constant 0 : i32
    %c0_i32_1 = arith.constant 0 : i32
    %c0_i32_2 = arith.constant 0 : i32
    return %arg0, %c0_i32, %c0_i32_0, %c0_i32_1 : i32, i32, i32, i32
  }
  func.func @transform_7(%arg0: i32) -> (i32, i32, i32, i32) {
    %c0_i32 = arith.constant 0 : i32
    %c0_i32_0 = arith.constant 0 : i32
    %c0_i32_1 = arith.constant 0 : i32
    %c0_i32_2 = arith.constant 0 : i32
    return %arg0, %c0_i32, %c0_i32_0, %c0_i32_1 : i32, i32, i32, i32
  }
  func.func @transform_8(%arg0: i32) -> (i32, i32, i32, i32) {
    %c0_i32 = arith.constant 0 : i32
    %c0_i32_0 = arith.constant 0 : i32
    %c0_i32_1 = arith.constant 0 : i32
    %c0_i32_2 = arith.constant 0 : i32
    return %arg0, %c0_i32, %c0_i32_0, %c0_i32_1 : i32, i32, i32, i32
  }
  func.func @transform_9(%arg0: i32) -> (i32, i32, i32, i32) {
    %c0_i32 = arith.constant 0 : i32
    %c0_i32_0 = arith.constant 0 : i32
    %c0_i32_1 = arith.constant 0 : i32
    %c0_i32_2 = arith.constant 0 : i32
    return %arg0, %c0_i32, %c0_i32_0, %c0_i32_1 : i32, i32, i32, i32
  }
  func.func @transform_10(%arg0: i32) -> (i32, i32, i32, i32) {
    %c0_i32 = arith.constant 0 : i32
    %c0_i32_0 = arith.constant 0 : i32
    %c0_i32_1 = arith.constant 0 : i32
    %c0_i32_2 = arith.constant 0 : i32
    return %arg0, %c0_i32, %c0_i32_0, %c0_i32_1 : i32, i32, i32, i32
  }
  func.func @transform_11(%arg0: i32) -> (i32, i32, i32) {
    %c0_i32 = arith.constant 0 : i32
    %c0_i32_0 = arith.constant 0 : i32
    %c0_i32_1 = arith.constant 0 : i32
    return %arg0, %c0_i32, %c0_i32_0 : i32, i32, i32
  }
}

</mosaic_0001>

<bundles_post_ra>
// kernel: _lambda_.2
= control target key start
LH: loop header
LB: loop body
LE: loop exit
PB: predicated region body
PF: predicated region fallthrough
CT: control target
= control target key end

     0   :  { %s517_s6 = smov 0   ;;  %s660_s0 = inlined_call_operand.vmem [shape: f32[2,3,12,12], index: 0, kind: input, shape index: {}]   ;;  %s661_s1 = inlined_call_operand.vmem [shape: f32[2,4,3], index: 1, kind: output, shape index: {}]  }
   0x1 LB: > { %s462_s7 = sadd.s32 4294967295, %s504_s6   ;;  %p466_p0 = scmp.ge.s32.totalorder %s504_s6, 1  ;;  %s504_s6 = sphi %s517_s6, %s11_s6  }
   0x2   : > { %p87_p1 = scmp.lt.s32.totalorder %s504_s6, 3 }
   0x4   : > { %p88_p2 = pnand %p466_p0, %p87_p1 }
   0x5   : > { %p106_p3 = scmp.lt.s32.totalorder (!%p88_p2), %s462_s7, 1 }
   0x6   : > { %91 = sbr.rel (%p88_p2) target bundleno = 571 (0x23b), region = 24 }
   0xb   : > { %v186_v0 = vlaneseq  ;;  %s663_s7 = smov (!%p106_p3, %s462_s7), 1  ;;  %vm121_vm0 = vcmask 97280   ;;  %vm125_vm1 = vcmask 93184   ;;  %v506_v20 = vmov 0  }
   0xc   : > { %s483_s8 = smul.u32 48, %s663_s7  ;;  %495 = vset.pattern.permute.xlu2 %v506_v20  ;;  %vm199_vm11 = vcmask 1041409   ;;  %vm201_vm12 = vcmask 1042434   ;;  %vm204_vm13 = vcmask 92160   ;;  %vm191_vm14 = vcmask 130112   ;;  %s468_s12 = sshll.u32 %s663_s7, 2 }
   0xd   : > { %v218_v1 = vshrl.u32 %v186_v0, 7  ;;  %v553_v19 = vand.u32 127, %v186_v0  ;;  %s114_s15 = scalar_lea.vmem %s661_s1, %s468_s12 }
   0xe   : > { %s110_s11 = scalar_lea.vmem %s660_s0, %s483_s8 }
   0xf   : > { %493 = vset.pattern.permute.xlu0 %v218_v1  ;;  %v225_v2 = vadd.s32 8, %v218_v1  ;;  %v531_v3 = vld [vmem:[%s110_s11 + $0x10] sm:$0xff]  ;;  %v115_v4 = vld [vmem:[%s110_s11] sm:$0xff]  ;;  %v533_v5 = vld [vmem:[%s110_s11 + $0x18] sm:$0xf] }
  0x10   : > { %v129_v6 = vsel %vm121_vm0, %v531_v3, -inf  ;;  %v122_v7 = vsel %vm121_vm0, %v115_v4, -inf  ;;  %v132_v8 = vsel %vm125_vm1, %v533_v5, -inf  ;;  %v540_v9 = vld [vmem:[%s110_s11 + $0x8] sm:$0xf]  ;;  %v542_v10 = vld [vmem:[%s110_s11 + $0x20] sm:$0xff] }
  0x11   : > { %494 = vset.pattern.permute.xlu1 %v225_v2  ;;  %123 = vmax.xlane.f32.xlu0 %v122_v7  ;;  %v148_v11 = vmax.f32 %v129_v6, %v132_v8  ;;  %v126_v12 = vsel %vm125_vm1, %v540_v9, -inf  ;;  %v135_v13 = vsel %vm121_vm0, %v542_v10, -inf  ;;  %v548_v15 = vld [vmem:[%s110_s11 + $0x28] sm:$0xf]  ;;  %v162_v18 = vsel %vm121_vm0, %v115_v4, 0.0 }
  0x12   : > { %130 = vmax.xlane.f32.xlu1 %v129_v6  ;;  %v141_v14 = vmax.f32 %v122_v7, %v126_v12  ;;  %136 = vmax.xlane.f32.xlu2 %v135_v13  ;;  %v138_v16 = vsel %vm125_vm1, %v548_v15, -inf }
  0x13   : > { %v155_v17 = vmax.f32 %v135_v13, %v138_v16  ;;  %v149_v24 = vrot.slane %v148_v11, 4  ;;  %v165_v13 = vsel %vm125_vm1, %v540_v9, 0.0  ;;  %v171_v9 = vsel %vm125_vm1, %v533_v5, 0.0 }
  0x14   : > { %v142_v25 = vrot.slane %v141_v14, 4 }
  0x15   : > { %v156_v26 = vrot.slane %v155_v17, 4  ;;  %v150_v28 = vmax.f32 %v148_v11, %v149_v24 }
  0x16   : > { %v143_v29 = vmax.f32 %v141_v14, %v142_v25 }
  0x17   : > { %v157_v30 = vmax.f32 %v155_v17, %v156_v26  ;;  %v151_v36 = vrot.slane %v150_v28, 2 }
  0x18   : > { %v144_v37 = vrot.slane %v143_v29, 2 }
  0x19   : > { %127 = vmax.xlane.f32.xlu0 %v126_v12  ;;  %v158_v38 = vrot.slane %v157_v30, 2  ;;  %v152_v39 = vmax.f32 %v150_v28, %v151_v36 }
  0x1a   : > { %133 = vmax.xlane.f32.xlu1 %v132_v8  ;;  %139 = vmax.xlane.f32.xlu2 %v138_v16  ;;  %v145_v40 = vmax.f32 %v143_v29, %v144_v37 }
  0x1b   : > { %v159_v41 = vmax.f32 %v157_v30, %v158_v38  ;;  %v153_v46 = vrot.slane %v152_v39, 1 }
  0x1c   : > { %v146_v47 = vrot.slane %v145_v40, 1 }
  0x1d   : > { %v160_v48 = vrot.slane %v159_v41, 1  ;;  %v154_v50 = vmax.f32 %v152_v39, %v153_v46 }
  0x1e   : > { %v147_v51 = vmax.f32 %v145_v40, %v146_v47 }
  0x1f   : > { %v161_v52 = vmax.f32 %v159_v41, %v160_v48  ;;  %vm215_vm8 = vcmp.gt.f32.partialorder %v154_v50, 0.0 }
  0x20   : > { %vm214_vm9 = vcmp.gt.f32.partialorder %v147_v51, 0.0  ;;  %v352_v56 = vsel %vm215_vm8, %v553_v19, 3221225472  ;;  %v330_v2 = vsel %vm215_vm8, %v553_v19, 1073741824 }
  0x21   : > { %vm216_vm10 = vcmp.gt.f32.partialorder %v161_v52, 0.0  ;;  %v351_v55 = vsel %vm214_vm9, %v553_v19, 3221225472  ;;  %v354_v58 = vrot.slane %v352_v56, 7  ;;  %v329_v4 = vsel %vm214_vm9, %v553_v19, 1073741824 }
  0x22   : > { %163 = vadd.xlane.f32.xlu2 %v162_v18  ;;  %v353_v57 = vsel %vm216_vm10, %v553_v19, 3221225472  ;;  %v331_v6 = vsel %vm216_vm10, %v553_v19, 1073741824  ;;  %v332_v7 = vrot.slane %v330_v2, 7 }
  0x23   : > { %v356_v59 = vrot.slane %v353_v57, 6  ;;  %v355_v60 = vsel %vm199_vm11, %v354_v58, %v351_v55  ;;  %v334_v8 = vrot.slane %v331_v6, 6 }
  0x24   : > { %v333_v11 = vsel %vm199_vm11, %v332_v7, %v329_v4 }
  0x25   : > { %v357_v62 = vsel %vm201_vm12, %v356_v59, %v355_v60  ;;  %v335_v12 = vsel %vm201_vm12, %v334_v8, %v333_v11 }
  0x26   : > { %v358_v14 = vsel %vm204_vm13, %v357_v62, 2147483648  ;;  %v585_v18 = vsel %vm204_vm13, %v335_v12, 2147483647 }
  0x27   : > { %v360_v16 = vshra.s32 %v358_v14, 16 }
  0x29   : > { %v582_v17 = vcvt.s32.f32 %v360_v16 }
  0x2d   : > { %221 = vperm.xlu0 %493, %v553_v19  }
  0x33   : > { %227 = vperm.xlu1 %494, %v553_v19  }
  0x35   : > { %496 = vset.pattern.permute.xlu0 %v506_v20 }
  0x3b   : > { %497 = vset.pattern.permute.xlu1 %v506_v20  ;;  %v168_v20 = vsel %vm121_vm0, %v531_v3, 0.0 }
  0x84   : > { %v124_v21 = vpop.xlane.xlu0 %123 }
  0x85   : > { %v131_v22 = vpop.xlane.xlu1 %130  ;;  %v137_v27 = vpop.xlane.xlu2 %136  ;;  %vm208_vm3 = vcmp.gt.f32.partialorder %v124_v21, 0.0  ;;  %v338_v21 = vshra.s32 %v585_v18, 16 }
  0x86   : > { %vm212_vm2 = vcmp.gt.f32.partialorder %v137_v27, 0.0  ;;  %vm210_vm4 = vcmp.gt.f32.partialorder %v131_v22, 0.0 }
  0x87   : > { %v591_v22 = vcvt.s32.f32 %v338_v21 }
  0x8c   : > { %v128_v23 = vpop.xlane.xlu0 %127 }
  0x8d   : > { %v134_v31 = vpop.xlane.xlu1 %133  ;;  %v140_v45 = vpop.xlane.xlu2 %139  ;;  %vm209_vm7 = vcmp.gt.f32.partialorder %v128_v23, 0.0 }
  0x8e   : > { %vm211_vm5 = vcmp.gt.f32.partialorder %v134_v31, 0.0  ;;  %vm213_vm6 = vcmp.gt.f32.partialorder %v140_v45, 0.0  ;;  %v599_v31 = vadd.s32 4294967288, %v553_v19 }
  0x95   : > { %v596_v23 = vpop.xlane.xlu2 %163 }
  0x9f   : > { %v222_v32 = vpop.permute.xlu0 %221 }
  0xa0   : > { %v283_v33 = vsel %vm212_vm2, %v222_v32, 3221225472  ;;  %v279_v34 = vsel %vm208_vm3, %v222_v32, 3221225472  ;;  %v229_v35 = vsel %vm208_vm3, %v222_v32, 1073741824  ;;  %v281_v44 = vsel %vm210_vm4, %v222_v32, 3221225472 }
  0xa1   : > { %298 = vperm.xlu0 %496, %v283_v33   ;;  %286 = vperm.xlu2 %495, %v279_v34   ;;  %v231_v49 = vsel %vm210_vm4, %v222_v32, 1073741824  ;;  %v233_v0 = vsel %vm212_vm2, %v222_v32, 1073741824 }
  0xa2   : > { %236 = vperm.xlu1 %497, %v229_v35  }
  0xa5   : > { %v228_v42 = vpop.permute.xlu1 %227 }
  0xa6   : > { %v232_v43 = vsel %vm211_vm5, %v228_v42, 1073741824  ;;  %v284_v53 = vsel %vm213_vm6, %v228_v42, 3221225472  ;;  %v280_v54 = vsel %vm209_vm7, %v228_v42, 3221225472  ;;  %v230_v61 = vsel %vm209_vm7, %v228_v42, 1073741824 }
  0xa7   : > { %v282_v63 = vsel %vm211_vm5, %v228_v42, 3221225472  ;;  %v234_v1 = vsel %vm213_vm6, %v228_v42, 1073741824  ;;  %vm392_vm7 = vcmask 16384  }
  0xa9   : > { %245 = vperm.xlu0 %496, %v232_v43   ;;  %292 = vperm.xlu2 %495, %v281_v44  }
  0xaa   : > { %242 = vperm.xlu1 %497, %v231_v49  }
  0xb1   : > { %301 = vperm.xlu2 %495, %v284_v53  }
  0xb2   : > { %289 = vperm.xlu1 %497, %v280_v54  }
  0xb9   : > { %239 = vperm.xlu2 %495, %v230_v61  }
  0xba   : > { %295 = vperm.xlu1 %497, %v282_v63   ;;  %v174_v63 = vsel %vm121_vm0, %v542_v10, 0.0 }
  0xc1   : > { %248 = vperm.xlu2 %495, %v233_v0   ;;  %v177_v0 = vsel %vm125_vm1, %v548_v15, 0.0 }
  0xc2   : > { %251 = vperm.xlu1 %497, %v234_v1   ;;  %v359_v1 = vand.u32 65535, %v358_v14 }
  0xc4   : > { %v361_v2 = vcvt.s32.f32 %v359_v1 }
  0xd3   : > { %166 = vadd.xlane.f32.xlu0 %v165_v13 }
  0xea   : > { %363 = vmax.xlane.f32.xlu2 %v582_v17 }
  0xec   : > { %169 = vadd.xlane.f32.xlu1 %v168_v20  ;;  %v337_v20 = vand.u32 65535, %v585_v18 }
  0xee   : > { %v339_v21 = vcvt.s32.f32 %v337_v20 }
  0xf2   : > { %341 = vmin.xlane.f32.xlu2 %v591_v22 }
  0xfa   : > { %172 = vadd.xlane.f32.xlu2 %v171_v9 }
  0xfb   : > { %v287_v24 = vpop.permute.xlu2 %286 }
  0xfc   : > { %v303_v5 = vperm.slane %v287_v24, %v553_v19 }
 0x103   : > { %v293_v25 = vpop.permute.xlu2 %292 }
 0x104   : > { %v306_v35 = vperm.slane %v293_v25, %v553_v19 }
 0x10b   : > { %v302_v3 = vpop.permute.xlu2 %301 }
 0x10c   : > { %v310_v38 = vperm.slane %v302_v3, %v599_v31 }
 0x113   : > { %v299_v28 = vpop.permute.xlu0 %298  ;;  %v240_v30 = vpop.permute.xlu2 %239 }
 0x114   : > { %v237_v26 = vpop.permute.xlu1 %236  ;;  %v309_v33 = vperm.slane %v299_v28, %v553_v19  ;;  %v254_v46 = vperm.slane %v240_v30, %v599_v31 }
 0x115   : > { %v253_v47 = vperm.slane %v237_v26, %v553_v19 }
 0x116   : > { %v311_v41 = vsel %vm191_vm14, %v310_v38, %v309_v33 }
 0x117   : > { %v255_v56 = vsel %vm191_vm14, %v254_v46, %v253_v47 }
 0x11b   : > { %v246_v36 = vpop.permute.xlu0 %245  ;;  %v249_v48 = vpop.permute.xlu2 %248 }
 0x11c   : > { %v243_v27 = vpop.permute.xlu1 %242  ;;  %v257_v42 = vperm.slane %v246_v36, %v599_v31  ;;  %v259_v53 = vperm.slane %v249_v48, %v553_v19 }
 0x11d   : > { %v256_v43 = vperm.slane %v243_v27, %v553_v19 }
 0x11f   : > { %v258_v51 = vsel %vm191_vm14, %v257_v42, %v256_v43 }
 0x120   : > { %v262_v58 = vsel %vm199_vm11, %v258_v51, %v255_v56 }
 0x124   : > { %v290_v29 = vpop.permute.xlu1 %289 }
 0x125   : > { %v304_v32 = vperm.slane %v290_v29, %v599_v31  ;;  %v188_v29 = vperm.slane %v596_v23, %v553_v19 }
 0x127   : > { %v305_v39 = vsel %vm191_vm14, %v304_v32, %v303_v5 }
 0x12c   : > { %v296_v34 = vpop.permute.xlu1 %295 }
 0x12d   : > { %v307_v37 = vperm.slane %v296_v34, %v599_v31 }
 0x12f   : > { %v308_v40 = vsel %vm191_vm14, %v307_v37, %v306_v35 }
 0x130   : > { %v312_v44 = vsel %vm199_vm11, %v308_v40, %v305_v39 }
 0x131   : > { %v313_v45 = vsel %vm201_vm12, %v311_v41, %v312_v44 }
 0x132   : > { %v314_v49 = vsel %vm204_vm13, %v313_v45, 2147483648 }
 0x133   : > { %v316_v50 = vshra.s32 %v314_v49, 16  ;;  %v315_v8 = vand.u32 65535, %v314_v49 }
 0x134   : > { %v252_v52 = vpop.permute.xlu1 %251 }
 0x135   : > { %v260_v54 = vperm.slane %v252_v52, %v599_v31  ;;  %v318_v55 = vcvt.s32.f32 %v316_v50  ;;  %v317_v16 = vcvt.s32.f32 %v315_v8 }
 0x137   : > { %v261_v57 = vsel %vm191_vm14, %v260_v54, %v259_v53  ;;  %319 = vmax.xlane.f32.xlu0 %v318_v55 }
 0x138   : > { %v263_v59 = vsel %vm201_vm12, %v261_v57, %v262_v58 }
 0x139   : > { %v264_v60 = vsel %vm204_vm13, %v263_v59, 2147483647 }
 0x13a   : > { %v266_v61 = vshra.s32 %v264_v60, 16  ;;  %v265_v15 = vand.u32 65535, %v264_v60 }
 0x13c   : > { %v268_v62 = vcvt.s32.f32 %v266_v61  ;;  %v267_v9 = vcvt.s32.f32 %v265_v15 }
 0x13e   : > { %269 = vmin.xlane.f32.xlu1 %v268_v62 }
 0x13f   : > { %175 = vadd.xlane.f32.xlu0 %v174_v63 }
 0x146   : > { %178 = vadd.xlane.f32.xlu1 %v177_v0  ;;  %v167_v7 = vpop.xlane.xlu0 %166 }
 0x147   : > { %v190_v18 = vperm.slane %v167_v7, %v599_v31 }
 0x149   : > { %v192_v33 = vsel %vm191_vm14, %v190_v18, %v188_v29 }
 0x15d   : > { %v364_v4 = vpop.xlane.xlu2 %363 }
 0x15e   : > { %vm365_vm15 = vcmp.eq.f32.partialorder %v582_v17, %v364_v4  ;;  %v370_v38 = vcvt.f32.s32 %v364_v4 }
 0x15f   : > { %v366_v6 = vsel %vm365_vm15, %v361_v2, -inf  ;;  %v170_v12 = vpop.xlane.xlu1 %169 }
 0x160   : > { %367 = vmax.xlane.f32.xlu0 %v366_v6  ;;  %v193_v26 = vperm.slane %v170_v12, %v553_v19  ;;  %v371_v42 = vshll.u32 %v370_v38, 16 }
 0x165   : > { %v342_v11 = vpop.xlane.xlu2 %341 }
 0x166   : > { %vm343_vm1 = vcmp.eq.f32.partialorder %v591_v22, %v342_v11  ;;  %v348_v45 = vcvt.f32.s32 %v342_v11 }
 0x167   : > { %v344_v25 = vsel %vm343_vm1, %v339_v21, inf }
 0x168   : > { %v349_v52 = vshll.u32 %v348_v45, 16 }
 0x16d   : > { %v173_v17 = vpop.xlane.xlu2 %172 }
 0x16e   : > { %v194_v27 = vperm.slane %v173_v17, %v599_v31 }
 0x170   : > { %v195_v22 = vsel %vm191_vm14, %v194_v27, %v193_v26 }
 0x171   : > { %v200_v5 = vsel %vm199_vm11, %v195_v22, %v192_v33 }
 0x1aa   : > { %v320_v13 = vpop.xlane.xlu0 %319 }
 0x1ab   : > { %vm321_vm0 = vcmp.eq.f32.partialorder %v318_v55, %v320_v13  ;;  %v326_v39 = vcvt.f32.s32 %v320_v13 }
 0x1ac   : > { %v322_v10 = vsel %vm321_vm0, %v317_v16, -inf }
 0x1ad   : > { %323 = vmax.xlane.f32.xlu2 %v322_v10  ;;  %v327_v43 = vshll.u32 %v326_v39, 16 }
 0x1b1   : > { %v270_v14 = vpop.xlane.xlu1 %269 }
 0x1b2   : > { %vm271_vm2 = vcmp.eq.f32.partialorder %v268_v62, %v270_v14  ;;  %v176_v3 = vpop.xlane.xlu0 %175  ;;  %v276_v46 = vcvt.f32.s32 %v270_v14 }
 0x1b3   : > { %v272_v24 = vsel %vm271_vm2, %v267_v9, inf  ;;  %v196_v28 = vperm.slane %v176_v3, %v553_v19 }
 0x1b4   : > { %273 = vmin.xlane.f32.xlu1 %v272_v24  ;;  %v277_v53 = vshll.u32 %v276_v46, 16 }
 0x1b5   : > { %345 = vmin.xlane.f32.xlu2 %v344_v25 }
 0x1b9   : > { %v179_v30 = vpop.xlane.xlu1 %178 }
 0x1ba   : > { %v197_v32 = vperm.slane %v179_v30, %v599_v31 }
 0x1bc   : > { %v198_v34 = vsel %vm191_vm14, %v197_v32, %v196_v28 }
 0x1bd   : > { %v202_v35 = vsel %vm201_vm12, %v198_v34, %v200_v5 }
 0x1be   : > { %v205_v36 = vsel %vm204_vm13, %v202_v35, 0.0 }
 0x1bf   : > { %206 = vadd.xlane.f32.xlu0 %v205_v36 }
 0x1d3   : > { %v368_v37 = vpop.xlane.xlu0 %367 }
 0x1d4   : > { %v369_v23 = vcvt.f32.s32 %v368_v37 }
 0x1d6   : > { %v372_v31 = vadd.s32 %v371_v42, %v369_v23 }
 0x1d8   : > { %v378_v48 = vadd.s32 1, %v372_v31 }
 0x1da   : > { %vm379_vm3 = vcmp.lt.s32.totalorder %v378_v48, 11 }
 0x1db   : > { %v380_v57 = vsel %vm379_vm3, %v378_v48, 11 }
 0x1dc   : > { %v473_v61 = vcvt.s32.f32 %v380_v57 }
 0x220   : > { %v324_v40 = vpop.xlane.xlu2 %323 }
 0x221   : > { %v325_v41 = vcvt.f32.s32 %v324_v40 }
 0x223   : > { %v328_v44 = vadd.s32 %v327_v43, %v325_v41 }
 0x225   : > { %v381_v49 = vadd.s32 1, %v328_v44 }
 0x227   : > { %v274_v47 = vpop.xlane.xlu1 %273  ;;  %vm382_vm4 = vcmp.lt.s32.totalorder %v381_v49, 11 }
 0x228   : > { %v275_v50 = vcvt.f32.s32 %v274_v47  ;;  %v346_v51 = vpop.xlane.xlu2 %345  ;;  %v383_v58 = vsel %vm382_vm4, %v381_v49, 11 }
 0x229   : > { %v347_v54 = vcvt.f32.s32 %v346_v51  ;;  %v475_v62 = vcvt.s32.f32 %v383_v58 }
 0x22a   : > { %v278_v55 = vadd.s32 %v277_v53, %v275_v50 }
 0x22b   : > { %v350_v56 = vadd.s32 %v349_v52, %v347_v54 }
 0x22c   : > { %v481_v59 = vcvt.s32.f32 %v278_v55  ;;  %vm376_vm5 = vcmp.gt.s32.totalorder %v278_v55, 0 }
 0x22d   : > { %v479_v60 = vcvt.s32.f32 %v350_v56  ;;  %vm374_vm6 = vcmp.gt.s32.totalorder %v350_v56, 0 }
 0x22e   : > { %v482_v0 = vsel %vm376_vm5, %v481_v59, 0.0 }
 0x22f   : > { %v480_v1 = vsel %vm374_vm6, %v479_v60, 0.0 }
 0x232   : > { %v207_v63 = vpop.xlane.xlu0 %206 }
 0x233   : > { %vm373_vm8 = vcmp.eq.f32.partialorder %v207_v63, 0.0 }
 0x234   : > { %v470_v2 = vsel %vm373_vm8, 0.0, %v480_v1  ;;  %v472_v4 = vsel %vm373_vm8, 0.0, %v482_v0  ;;  %v474_v6 = vsel %vm373_vm8, 0.0, %v473_v61  ;;  %v476_v7 = vsel %vm373_vm8, 0.0, %v475_v62 }
 0x235   : > { %v390_v8 = vperm.slane %v470_v2, %v553_v19  ;;  %v396_v11 = vperm.slane %v472_v4, %v553_v19  ;;  %v401_v12 = vperm.slane %v474_v6, %v553_v19  ;;  %v406_v13 = vperm.slane %v476_v7, %v553_v19 }
 0x237   : > { %393 = vst.msk [vmem:[%s114_s15] sm:$0x1] %vm392_vm7, %v390_v8 }
 0x238   : > { %398 = vst.msk [vmem:[%s114_s15 + $0x1] sm:$0x1] %vm392_vm7, %v396_v11 }
 0x239   : > { %403 = vst.msk [vmem:[%s114_s15 + $0x2] sm:$0x1] %vm392_vm7, %v401_v12 }
 0x23a   : > { %408 = vst.msk [vmem:[%s114_s15 + $0x3] sm:$0x1] %vm392_vm7, %v406_v13 }
 0x23b PF: > { %s11_s6 = sadd.s32 1, %s504_s6  }
 0x23c   : > { %p8_p4 = scmp.ge.s32.totalorder %s11_s6, 4  }
 0x23e   :  { %10 = sbr.rel (!%p8_p4) target bundleno = 1 (0x1), region = 54 }

// kernel: _lambda_.3
= control target key start
LH: loop header
LB: loop body
LE: loop exit
PB: predicated region body
PF: predicated region fallthrough
CT: control target
= control target key end

     0   :  { %s2219_s0 = inlined_call_operand.vmem [shape: f32[2,64,16], index: 0, kind: input, shape index: {}]   ;;  %s2220_s1 = inlined_call_operand.vmem [shape: f32[2,3,12,12], index: 1, kind: input, shape index: {}]   ;;  %s2221_s2 = inlined_call_operand.vmem [shape: f32[48,64], index: 2, kind: input, shape index: {}]   ;;  %s2222_s3 = inlined_call_operand.vmem [shape: f32[16,12], index: 3, kind: input, shape index: {}]   ;;  %s2223_s4 = inlined_call_operand.vmem [shape: f32[48,12], index: 4, kind: input, shape index: {}]   ;;  %s2224_s5 = inlined_call_operand.vmem [shape: f32[4,48], index: 5, kind: input, shape index: {}]   ;;  %s2225_s6 = inlined_call_operand.vmem [shape: f32[2,3,12,4], index: 6, kind: input, shape index: {}]   ;;  %s2226_s7 = inlined_call_operand.vmem [shape: f32[2,3,4,12], index: 7, kind: input, shape index: {}]   ;;  %s2227_s8 = inlined_call_operand.vmem [shape: f32[2,3,4,12], index: 8, kind: input, shape index: {}]   ;;  %s2228_s9 = inlined_call_operand.vmem [shape: f32[2,3,12,4], index: 9, kind: input, shape index: {}]   ;;  %s2229_s10 = inlined_call_operand.hbm [shape: f32[2,3,4,4], index: 10, kind: output, shape index: {0}]   ;;  %s2230_s11 = inlined_call_operand.vmem [shape: f32[2,3,4], index: 11, kind: output, shape index: {1}]  }
   0x1   :  { %2236 = sst [smem:[#allocation7_spill]] %s2219_s0 }
   0x2   :  { %2237 = sst [smem:[#allocation8_spill]] %s2220_s1 }
   0x3   :  { %2238 = sst [smem:[#allocation9_spill]] %s2222_s3 }
   0x4   :  { %17 = vsyncpa [#allocation3], 0 }
   0x5   :  { %19 = vsyncpa [#allocation3 + $0x1], 0  ;;  %s1834_s17 = smov 0   ;;  %s1836_s18 = smov 0  }
   0x6   :  { %s1838_s19 = smov 0   ;;  %s1840_s20 = smov 0  }
   0x7 LB: > { %2239 = sst [smem:[#allocation5_spill]] %s1764_s19  ;;  %s1855_s21 = sadd.s32 4294967295, %s1768_s20   ;;  %s1768_s20 = sphi %s1840_s20, %s2253_s20   ;;  %s1764_s19 = sphi %s1838_s19, %s2250_s19   ;;  %s1760_s18 = sphi %s1836_s18, %s2252_s18   ;;  %s1756_s17 = sphi %s1834_s17, %s2251_s17  }
   0x8   : > { %s1534_s22 = sadd.s32 4294967294, %s1768_s20   ;;  %s1859_s23 = sadd.s32 1, %s1768_s20  }
   0x9   : > { %s272_s24 = sadd.s32 1, %s1764_s19  ;;  %s269_s25 = ssub.s32 %s1768_s20, %s1859_s23 }
   0xa   : > { %p282_p0 = scmp.ne.s32.totalorder %s1764_s19, %s1760_s18  ;;  %p270_p1 = scmp.eq.s32.totalorder %s269_s25, 0 }
   0xb   : > { %p283_p2 = scmp.eq.s32.totalorder %s1855_s21, 1  ;;  %p288_p3 = scmp.ne.s32.totalorder %s1760_s18, %s1756_s17 }
   0xc   : > { %p289_p4 = scmp.eq.s32.totalorder %s1534_s22, 1  ;;  %p1537_p7 = scmp.ge.s32.totalorder %s1768_s20, 1 }
   0xd   : > { %s1870_s26 = scalar_select %p270_p1, %s1764_s19, %s272_s24  }
   0xe   : > { %p1872_p5 = por %p283_p2, %p282_p0  ;;  %p1876_p6 = por %p289_p4, %p288_p3 }
   0xf   : > { %2240 = sst [smem:[#allocation6_spill]] %s1870_s26  ;;  %p393_p8 = scmp.lt.s32.totalorder %s1768_s20, 3 }
  0x11   : > { %p394_p9 = pnand %p1537_p7, %p393_p8 }
  0x12   : > { %p462_p10 = scmp.lt.s32.totalorder (!%p394_p9), %s1855_s21, 1  ;;  %s2243_s1 = sld [smem:[#allocation8_spill]] (!%p394_p9) }
  0x13   : > { %397 = sbr.rel (%p394_p9) target bundleno = 2312 (0x908), region = 60  ;;  %s2244_s0 = sld [smem:[#allocation7_spill]] (!%p394_p9) }
  0x14   : > { %s2245_s3 = sld [smem:[#allocation9_spill]] (!%p394_p9)  ;;  %s2234_s22 = smov (!%p394_p9), 1e-06  }
  0x18   : > { %s1884_s29 = scalar_select %p462_p10, %s1855_s21, 1  ;;  %vm646_vm0 = vcmask 1043456   ;;  %vm642_vm1 = vcmask 97280   ;;  %vm506_vm2 = vcmask 130048   ;;  %vm701_vm3 = vcmask 27648   ;;  %v572_v51 = vld [vmem:[%s2221_s2] sm:$0xff] }
  0x19   : > { %vm732_vm5 = vcmask 31744   ;;  %v1770_v13 = vmov 0.0   ;;  %vm578_vm10 = vcmask 523264   ;;  %v573_v52 = vld [vmem:[%s2221_s2 + $0x8] sm:$0xff]  ;;  %v574_v53 = vld [vmem:[%s2221_s2 + $0x10] sm:$0xff]  ;;  %v575_v55 = vld [vmem:[%s2221_s2 + $0x18] sm:$0xff] }
  0x1a   : > { %s1887_s30 = smul.u32 48, %s1884_s29  ;;  %s1638_s26 = sshll.u32 %s1884_s29, 6  ;;  %v505_v6 = vld [vmem:[%s2245_s3 + $0x8] sm:$0xff]  ;;  %v504_v7 = vld [vmem:[%s2245_s3] sm:$0xff]  ;;  %v2020_v61 = vld [vmem:[%s2223_s4 + $0x10] sm:$0xff]  ;;  %vm860_vm11 = vcmask 392192  }
  0x1b   : > { %s2232_s12 = smul.u32 12, %s1884_s29  ;;  %s1922_s16 = scalar_lea.vmem %s2244_s0, %s1638_s26  ;;  %545 = vmatpush.msra.mxu0 %v505_v6  ;;  %v1998_v57 = vld [vmem:[%s2223_s4] sm:$0xff]  ;;  %v2009_v59 = vld [vmem:[%s2223_s4 + $0x8] sm:$0xff]  ;;  %v2027_v62 = vld [vmem:[%s2223_s4 + $0x18] sm:$0xff] }
  0x1c   : > { %s1894_s15 = scalar_lea.vmem %s2243_s1, %s1887_s30  ;;  %s1900_s24 = scalar_lea.vmem %s2228_s9, %s1887_s30  ;;  %v496_v8 = vld [vmem:[%s1922_s16] sm:$0xff]  ;;  %v497_v9 = vld [vmem:[%s1922_s16 + $0x8] sm:$0xff]  ;;  %v498_v10 = vld [vmem:[%s1922_s16 + $0x10] sm:$0xff] }
  0x1d   : > { %v640_v0 = vld [vmem:[%s1894_s15 + $0x8] sm:$0xf]  ;;  %v639_v1 = vld [vmem:[%s1894_s15] sm:$0xff]  ;;  %s1909_s19 = scalar_lea.vmem %s2227_s8, %s2232_s12  ;;  %546 = vmatpush.msra.mxu0 %v504_v7  ;;  %s2233_s26 = sand.u32 1, %s1760_s18   ;;  %v499_v16 = vld [vmem:[%s1922_s16 + $0x18] sm:$0xff] }
  0x1e   : > { %v671_v2 = vld [vmem:[%s1900_s24 + $0x8] sm:$0xf]  ;;  %1560 = vmatpush.msk.msra.mxu2 %vm646_vm0, %v640_v0  ;;  %v641_v3 = vld [vmem:[%s1909_s19] sm:$0xf]  ;;  %1546 = vmatmul.msk.f32.vlgmr.msra.gmra.mxu0 %vm506_vm2, %v496_v8  ;;  %s1641_s13 = smul.u32 12, %s2233_s26  ;;  %s1942_s25 = scalar_lea.vmem %s2225_s6, %s1887_s30  ;;  %v502_v20 = vld [vmem:[%s1922_s16 + $0x30] sm:$0xff] }
  0x1f   : > { %1562 = vmatpush.msk.msra.mxu3 %vm646_vm0, %v671_v2  ;;  %v670_v4 = vld [vmem:[%s1900_s24] sm:$0xff]  ;;  %v731_v17 = vld [vmem:[%s1942_s25 + $0x8] sm:$0xf]  ;;  %v503_v21 = vld [vmem:[%s1922_s16 + $0x38] sm:$0xff]  ;;  %s2246_s30 = smul.u32 12, %s1884_s29 }
  0x20   : > { %665 = vmatpush.msra.mxu2 %v639_v1  ;;  %v730_v12 = vld [vmem:[%s1942_s25] sm:$0xff]  ;;  %s1947_s1 = scalar_lea.vmem [#allocation2], %s1641_s13  ;;  %v501_v19 = vld [vmem:[%s1922_s16 + $0x28] sm:$0xff]  ;;  %s2247_s0 = smov 1e-06  }
  0x21   : > { %1561 = vmatmul.msk.f32.vlgmr.msra.gmra.mxu2 %vm642_vm1, %v641_v3  ;;  %693 = vmatpush.msra.mxu3 %v670_v4  ;;  %v500_v18 = vld [vmem:[%s1922_s16 + $0x20] sm:$0xff]  ;;  %s1971_s14 = scalar_lea.vmem %s2226_s7, %s2246_s30  ;;  %v577_v60 = vld [vmem:[%s2221_s2 + $0x28] sm:$0xff]  ;;  %s1656_s12 = smul.u32 12, %s1855_s21 }
  0x22   : > { %v765_v22 = vld [vmem:[%s1971_s14] sm:$0xf]  ;;  %v2041_v0 = vld [vmem:[%s2223_s4 + $0x28] sm:$0xff]  ;;  %s1726_s21 = scalar_lea.hbm %s2229_s10, 24 }
  0x23   : > { %1568 = vmatpush.msk.msrb.mxu3 %vm646_vm0, %v765_v22  ;;  %v576_v58 = vld [vmem:[%s2221_s2 + $0x20] sm:$0xff]  ;;  %v1579_v22 = vld [vmem:[%s1894_s15 + $0x10] sm:$0xff] }
  0x24   : > { %v2034_v63 = vld [vmem:[%s2223_s4 + $0x20] sm:$0xff] }
  0x26   : > { %1547 = vmatmul.msk.f32.gmra.mxu0 %vm506_vm2, %v497_v9 }
  0x2e   : > { %1548 = vmatmul.msk.f32.gmra.mxu0 %vm506_vm2, %v498_v10 }
  0x36   : > { %1549 = vmatmul.msk.f32.gmra.mxu0 %vm506_vm2, %v499_v16 }
  0x3e   : > { %1550 = vmatmul.msk.f32.gmra.mxu0 %vm506_vm2, %v500_v18 }
  0x46   : > { %1551 = vmatmul.msk.f32.gmra.mxu0 %vm506_vm2, %v501_v19 }
  0x4e   : > { %1552 = vmatmul.msk.f32.gmra.mxu0 %vm506_vm2, %v502_v20  ;;  %v2066_v20 = vld [vmem:[%s2224_s5] sm:$0xf] }
  0x56   : > { %1553 = vmatmul.msk.f32.gmra.mxu0 %vm506_vm2, %v503_v21  ;;  %v1580_v21 = vld [vmem:[%s1894_s15 + $0x18] sm:$0xf] }
  0x9b   : > { %v548_v23 = vpop.f32.mrf.mxu0 }
  0xa3   : > { %v551_v24 = vpop.f32.mrf.mxu0 }
  0xa4   : > { %v667_v5 = vpop.f32.mrf.mxu2 }
  0xa5   : > { %1563 = vmatmul.msk.f32.vlgmr.msra.gmra.mxu3 %vm642_vm1, %v667_v5 }
  0xab   : > { %v554_v29 = vpop.f32.mrf.mxu0 }
  0xb3   : > { %v557_v33 = vpop.f32.mrf.mxu0 }
  0xbb   : > { %v560_v35 = vpop.f32.mrf.mxu0 }
  0xc3   : > { %v563_v37 = vpop.f32.mrf.mxu0 }
  0xcb   : > { %v566_v38 = vpop.f32.mrf.mxu0 }
  0xd3   : > { %v569_v39 = vpop.f32.mrf.mxu0 }
  0xd4   : > { %605 = vmatpush.msra.mxu1 %v569_v39 }
  0xd6   : > { %606 = vmatpush.msra.mxu1 %v566_v38 }
  0xd8   : > { %607 = vmatpush.msra.mxu1 %v563_v37 }
  0xda   : > { %608 = vmatpush.msra.mxu1 %v560_v35 }
  0xdc   : > { %609 = vmatpush.msra.mxu1 %v557_v33  ;;  %v1595_v33 = vld [vmem:[%s1971_s14 + $0x4] sm:$0xf] }
  0xde   : > { %610 = vmatpush.msra.mxu1 %v554_v29  ;;  %v1590_v29 = vld [vmem:[%s1942_s25 + $0x10] sm:$0xff] }
  0xe0   : > { %611 = vmatpush.msra.mxu1 %v551_v24  ;;  %v1585_v24 = vld [vmem:[%s1900_s24 + $0x18] sm:$0xf] }
  0xe2   : > { %612 = vmatpush.msra.mxu1 %v548_v23  ;;  %v1581_v23 = vld [vmem:[%s1909_s19 + $0x4] sm:$0xf] }
  0xe3   : > { %1554 = vmatmul.msk.f32.vlgmr.msra.gmra.mxu1 %vm578_vm10, %v572_v51 }
  0xe4   : > { %1596 = vmatpush.msk.msrb.mxu1 %vm646_vm0, %v1595_v33  ;;  %v1623_v33 = vld [vmem:[%s1971_s14 + $0x8] sm:$0xf] }
  0xeb   : > { %1555 = vmatmul.msk.f32.gmra.mxu1 %vm578_vm10, %v573_v52 }
  0xf3   : > { %1556 = vmatmul.msk.f32.gmra.mxu1 %vm578_vm10, %v574_v53 }
  0xfb   : > { %1557 = vmatmul.msk.f32.gmra.mxu1 %vm578_vm10, %v575_v55 }
 0x103   : > { %1558 = vmatmul.msk.f32.gmra.mxu1 %vm578_vm10, %v576_v58  ;;  %v1607_v58 = vld [vmem:[%s1894_s15 + $0x20] sm:$0xff] }
 0x10b   : > { %1559 = vmatmul.msk.f32.gmra.mxu1 %vm578_vm10, %v577_v60  ;;  %v1609_v60 = vld [vmem:[%s1909_s19 + $0x8] sm:$0xf] }
 0x128   : > { %v695_v11 = vpop.f32.mrf.mxu3 }
 0x129   : > { %vm698_vm4 = vcmp.gt.f32.partialorder %v695_v11, 0.0 }
 0x12a   : > { %v1564_v14 = vsel %vm698_vm4, 1.0, %v1770_v13  ;;  %vm884_vm4 = vcmask 93184  }
 0x12b   : > { %702 = vst.msk [vmem:[%s1947_s1] sm:$0xf] %vm701_vm3, %v1564_v14  ;;  %1565 = vmatpush.msk.msrb.mxu2 %vm646_vm0, %v1564_v14  ;;  %v703_v15 = vsel %vm701_vm3, %v1564_v14, 0.0 }
 0x12c   : > { %1566 = vmatmul.msk.f32.vlgmr.msrb.gmra.mxu2 %vm732_vm5, %v730_v12  ;;  %704 = vadd.xlane.f32.xlu0 %v703_v15 }
 0x134   : > { %1567 = vmatmul.msk.f32.gmra.mxu2 %vm732_vm5, %v731_v17 }
 0x160   : > { %v2045_v1 = vpop.f32.mrf.mxu1 }
 0x168   : > { %v2047_v2 = vpop.f32.mrf.mxu1 }
 0x170   : > { %v2049_v5 = vpop.f32.mrf.mxu1 }
 0x178   : > { %v2051_v7 = vpop.f32.mrf.mxu1 }
 0x180   : > { %v2053_v9 = vpop.f32.mrf.mxu1 }
 0x188   : > { %v2055_v11 = vpop.f32.mrf.mxu1 }
 0x19f   : > { %v705_v25 = vpop.xlane.xlu0 %704 }
 0x1a0   : > { %v706_v26 = vrot.slane %v705_v25, 4 }
 0x1a2   : > { %v707_v27 = vadd.f32 %v706_v26, %v705_v25  ;;  %v1584_v25 = vld [vmem:[%s1900_s24 + $0x10] sm:$0xff] }
 0x1a4   : > { %v708_v28 = vrot.slane %v707_v27, 2 }
 0x1a6   : > { %v709_v30 = vadd.f32 %v708_v28, %v707_v27 }
 0x1a8   : > { %v710_v31 = vrot.slane %v709_v30, 1 }
 0x1aa   : > { %v711_v32 = vadd.f32 %v710_v31, %v709_v30 }
 0x1ac   : > { %1644 = vpush %v711_v32  ;;  %v1591_v32 = vld [vmem:[%s1942_s25 + $0x18] sm:$0xf] }
 0x1af   : > { %v759_v34 = vpop.f32.mrf.mxu2 }
 0x1b0   : > { %1569 = vmatmul.msk.f32.vlgmr.msrb.gmra.mxu3 %vm732_vm5, %v759_v34 }
 0x1b7   : > { %v762_v36 = vpop.f32.mrf.mxu2 }
 0x1b8   : > { %1570 = vmatmul.msk.f32.gmra.mxu3 %vm732_vm5, %v762_v36 }
 0x1dd   : > { %s1645_s16 = spop %1644 }
 0x1de   : > { %s713_s30 = smax.f32 %s2234_s22, %s1645_s16 }
 0x1df   : > { %v714_v40 = vstv %s713_s30  ;;  %s1382_s30 = sshll.u32 %s1947_s1, 4  ;;  %s1383_s30 = int_to_ptr.vmem [resolvable:$true] %s1382_s30 }
 0x1e0   : > { %1700 = vrcp.f32 %v714_v40  ;;  %v726_v44 = vand.u32 2147483648, %v714_v40  ;;  %v724_v46 = vand.u32 2147483647, %v714_v40  ;;  %vm720_vm7 = vweird.f32 %v714_v40 }
 0x1e2   : > { %v727_v48 = vor.u32 1.1754944e-38, %v726_v44  ;;  %vm725_vm9 = vcmp.eq.f32.partialorder %v724_v46, 8.507059e+37 }
 0x1e6   : > { %v1701_v41 = vpop.eup %1700 }
 0x1e7   : > { %v716_v42 = vmul.f32 %v1701_v41, %v714_v40  ;;  %vm721_vm6 = vweird.f32 %v1701_v41 }
 0x1e8   : > { %vm722_vm8 = vmor %vm720_vm7, %vm721_vm6 }
 0x1e9   : > { %v717_v43 = vsub.f32 1.0, %v716_v42 }
 0x1eb   : > { %v718_v45 = vmul.f32 %v1701_v41, %v717_v43 }
 0x1ed   : > { %v719_v47 = vadd.f32 %v1701_v41, %v718_v45 }
 0x1ef   : > { %v723_v49 = vsel %vm722_vm8, %v1701_v41, %v719_v47 }
 0x1f0   : > { %v728_v50 = vsel %vm725_vm9, %v727_v48, %v723_v49 }
 0x1f1   : > { %1646 = vpush %v728_v50 }
 0x222   : > { %s2094_s26 = spop %1646 }
 0x233   : > { %v792_v54 = vpop.f32.mrf.mxu3 }
 0x23b   : > { %v795_v56 = vpop.f32.mrf.mxu3 }
 0x23c   : > { %1571 = vmatpush.msk.msra.mxu2 %vm646_vm0, %v795_v56  ;;  %v1608_v56 = vld [vmem:[%s1894_s15 + $0x28] sm:$0xf]  ;;  %s1545_s15 = sshll.u32 %s1884_s29, 2 }
 0x23d   : > { %s2147_s16 = scalar_lea.vmem %s2230_s11, %s1545_s15 }
 0x23e   : > { %834 = vmatpush.msra.mxu2 %v792_v54 }
 0x23f   : > { %1572 = vmatmul.msk.f32.vlgmr.msra.gmra.mxu2 %vm642_vm1, %v1998_v57 }
 0x240   : > { %1610 = vmatpush.msk.msrb.mxu2 %vm646_vm0, %v1608_v56 }
 0x242   : > { %1157 = vmatpush.msrb.mxu2 %v1607_v58 }
 0x244   : > { %1624 = vmatpush.msk.msra.mxu2 %vm646_vm0, %v1623_v33 }
 0x247   : > { %1573 = vmatmul.msk.f32.gmra.mxu2 %vm642_vm1, %v2009_v59 }
 0x24f   : > { %1574 = vmatmul.msk.f32.gmra.mxu2 %vm642_vm1, %v2020_v61 }
 0x257   : > { %1575 = vmatmul.msk.f32.gmra.mxu2 %vm642_vm1, %v2027_v62 }
 0x25f   : > { %1576 = vmatmul.msk.f32.gmra.mxu2 %vm642_vm1, %v2034_v63 }
 0x267   : > { %1577 = vmatmul.msk.f32.gmra.mxu2 %vm642_vm1, %v2041_v0 }
 0x26f   : > { %1611 = vmatmul.msk.f32.vlgmr.msrb.gmra.mxu2 %vm642_vm1, %v1609_v60 }
 0x2c2   : > { %v836_v3 = vpop.f32.mrf.mxu2 }
 0x2c3   : > { %v854_v19 = vmul.f32 %v836_v3, %v2045_v1 }
 0x2ca   : > { %v839_v4 = vpop.f32.mrf.mxu2 }
 0x2cb   : > { %v855_v18 = vmul.f32 %v839_v4, %v2047_v2 }
 0x2d2   : > { %v842_v6 = vpop.f32.mrf.mxu2 }
 0x2d3   : > { %v856_v17 = vmul.f32 %v842_v6, %v2049_v5 }
 0x2da   : > { %v845_v8 = vpop.f32.mrf.mxu2 }
 0x2db   : > { %v857_v16 = vmul.f32 %v845_v8, %v2051_v7 }
 0x2e2   : > { %v848_v10 = vpop.f32.mrf.mxu2 }
 0x2e3   : > { %v858_v15 = vmul.f32 %v848_v10, %v2053_v9 }
 0x2ea   : > { %v851_v12 = vpop.f32.mrf.mxu2 }
 0x2eb   : > { %v859_v14 = vmul.f32 %v851_v12, %v2055_v11 }
 0x2ed   : > { %874 = vmatpush.msra.mxu3 %v859_v14 }
 0x2ef   : > { %875 = vmatpush.msra.mxu3 %v858_v15 }
 0x2f1   : > { %876 = vmatpush.msra.mxu3 %v857_v16 }
 0x2f3   : > { %877 = vmatpush.msra.mxu3 %v856_v17 }
 0x2f5   : > { %878 = vmatpush.msra.mxu3 %v855_v18 }
 0x2f7   : > { %879 = vmatpush.msra.mxu3 %v854_v19 }
 0x2f8   : > { %1578 = vmatmul.msk.f32.vlgmr.msra.gmra.mxu3 %vm860_vm11, %v2066_v20 }
 0x2f9   : > { %1582 = vmatpush.msk.msrb.mxu3 %vm646_vm0, %v1580_v21  ;;  %v1613_v21 = vld [vmem:[%s1900_s24 + $0x28] sm:$0xf] }
 0x2fb   : > { %923 = vmatpush.msrb.mxu3 %v1579_v22  ;;  %v1612_v22 = vld [vmem:[%s1900_s24 + $0x20] sm:$0xff] }
 0x2fd   : > { %1586 = vmatpush.msk.msra.mxu3 %vm646_vm0, %v1585_v24 }
 0x2ff   : > { %952 = vmatpush.msra.mxu3 %v1584_v25 }
 0x300   : > { %1583 = vmatmul.msk.f32.vlgmr.msrb.gmra.mxu3 %vm642_vm1, %v1581_v23  ;;  %v1159_v23 = vpop.f32.mrf.mxu2 }
 0x37b   : > { %v2078_v26 = vpop.f32.mrf.mxu3 }
 0x383   : > { %v925_v27 = vpop.f32.mrf.mxu3 }
 0x384   : > { %1587 = vmatmul.msk.f32.vlgmr.msra.gmra.mxu3 %vm642_vm1, %v925_v27 }
 0x407   : > { %v954_v28 = vpop.f32.mrf.mxu3 }
 0x408   : > { %vm957_vm12 = vcmp.gt.f32.partialorder %v954_v28, 0.0  ;;  %v1618_v28 = vld [vmem:[%s1942_s25 + $0x20] sm:$0xff] }
 0x409   : > { %v1588_v30 = vsel %vm957_vm12, 1.0, %v1770_v13 }
 0x40a   : > { %1589 = vst.msk [vmem:[%s1947_s1 + $0x4] sm:$0xf] %vm701_vm3, %v1588_v30  ;;  %1592 = vmatpush.msk.msrb.mxu3 %vm646_vm0, %v1588_v30  ;;  %v962_v31 = vsel %vm701_vm3, %v1588_v30, 0.0 }
 0x40b   : > { %1593 = vmatmul.msk.f32.vlgmr.msrb.gmra.mxu3 %vm732_vm5, %v1590_v29  ;;  %963 = vadd.xlane.f32.xlu0 %v962_v31  ;;  %v1619_v31 = vld [vmem:[%s1942_s25 + $0x28] sm:$0xf] }
 0x413   : > { %1594 = vmatmul.msk.f32.gmra.mxu3 %vm732_vm5, %v1591_v32  ;;  %v885_v32 = vsel %vm884_vm4, %v2078_v26, 0.0 }
 0x47e   : > { %v964_v34 = vpop.xlane.xlu0 %963 }
 0x47f   : > { %v965_v35 = vrot.slane %v964_v34, 4 }
 0x481   : > { %v966_v36 = vadd.f32 %v965_v35, %v964_v34 }
 0x483   : > { %v967_v37 = vrot.slane %v966_v36, 2 }
 0x485   : > { %v968_v38 = vadd.f32 %v967_v37, %v966_v36 }
 0x487   : > { %v969_v39 = vrot.slane %v968_v38, 1 }
 0x489   : > { %v970_v40 = vadd.f32 %v969_v39, %v968_v38 }
 0x48b   : > { %1648 = vpush %v970_v40 }
 0x48e   : > { %v1018_v41 = vpop.f32.mrf.mxu3 }
 0x48f   : > { %1597 = vmatmul.msk.f32.vlgmr.msrb.gmra.mxu1 %vm732_vm5, %v1018_v41 }
 0x496   : > { %v1021_v42 = vpop.f32.mrf.mxu3 }
 0x497   : > { %1598 = vmatmul.msk.f32.gmra.mxu1 %vm732_vm5, %v1021_v42 }
 0x4bc   : > { %s1649_s22 = spop %1648 }
 0x4bd   : > { %s972_s3 = smax.f32 %s2247_s0, %s1649_s22  ;;  %s1381_s22 = scalar_lea.hbm %s2229_s10, %s1656_s12 }
 0x4be   : > { %v973_v43 = vstv %s972_s3  ;;  %s2248_s3 = sand.u32 1, %s1760_s18  }
 0x4bf   : > { %1702 = vrcp.f32 %v973_v43  ;;  %v985_v47 = vand.u32 2147483648, %v973_v43  ;;  %v983_v49 = vand.u32 2147483647, %v973_v43  ;;  %vm979_vm14 = vweird.f32 %v973_v43 }
 0x4c1   : > { %v986_v51 = vor.u32 1.1754944e-38, %v985_v47  ;;  %vm984_vm2 = vcmp.eq.f32.partialorder %v983_v49, 8.507059e+37 }
 0x4c5   : > { %v1703_v44 = vpop.eup %1702 }
 0x4c6   : > { %v975_v45 = vmul.f32 %v1703_v44, %v973_v43  ;;  %vm980_vm13 = vweird.f32 %v1703_v44  ;;  %v888_v43 = vstv %s2094_s26 }
 0x4c7   : > { %vm981_vm15 = vmor %vm979_vm14, %vm980_vm13 }
 0x4c8   : > { %v976_v46 = vsub.f32 1.0, %v975_v45 }
 0x4ca   : > { %v977_v48 = vmul.f32 %v1703_v44, %v976_v46 }
 0x4cc   : > { %v978_v50 = vadd.f32 %v1703_v44, %v977_v48 }
 0x4ce   : > { %v982_v52 = vsel %vm981_vm15, %v1703_v44, %v978_v50 }
 0x4cf   : > { %v987_v53 = vsel %vm984_vm2, %v986_v51, %v982_v52 }
 0x4d0   : > { %1650 = vpush %v987_v53 }
 0x501   : > { %s1651_s19 = spop %1650 }
 0x502   : > { %v1125_v35 = vstv %s1651_s19  ;;  %s1366_s19 = scalar_lea.sflag [#allocation3], %s2248_s3 }
 0x50c   : > { %v1052_v54 = vpop.f32.mrf.mxu1 }
 0x514   : > { %v1055_v55 = vpop.f32.mrf.mxu1 }
 0x515   : > { %1599 = vmatpush.msk.msrb.mxu0 %vm646_vm0, %v1055_v55 }
 0x517   : > { %1076 = vmatpush.msrb.mxu0 %v1052_v54 }
 0x518   : > { %1600 = vmatmul.msk.f32.vlgmr.msrb.gmra.mxu0 %vm642_vm1, %v1998_v57 }
 0x520   : > { %1601 = vmatmul.msk.f32.gmra.mxu0 %vm642_vm1, %v2009_v59 }
 0x528   : > { %1602 = vmatmul.msk.f32.gmra.mxu0 %vm642_vm1, %v2020_v61 }
 0x530   : > { %1603 = vmatmul.msk.f32.gmra.mxu0 %vm642_vm1, %v2027_v62 }
 0x538   : > { %1604 = vmatmul.msk.f32.gmra.mxu0 %vm642_vm1, %v2034_v63 }
 0x540   : > { %1605 = vmatmul.msk.f32.gmra.mxu0 %vm642_vm1, %v2041_v0 }
 0x595   : > { %v1078_v3 = vpop.f32.mrf.mxu0 }
 0x596   : > { %v1096_v19 = vmul.f32 %v1078_v3, %v2045_v1 }
 0x59d   : > { %v1081_v4 = vpop.f32.mrf.mxu0 }
 0x59e   : > { %v1097_v18 = vmul.f32 %v1081_v4, %v2047_v2 }
 0x5a5   : > { %v1084_v6 = vpop.f32.mrf.mxu0 }
 0x5a6   : > { %v1098_v17 = vmul.f32 %v1084_v6, %v2049_v5 }
 0x5ad   : > { %v1087_v8 = vpop.f32.mrf.mxu0 }
 0x5ae   : > { %v1099_v16 = vmul.f32 %v1087_v8, %v2051_v7 }
 0x5b5   : > { %v1090_v10 = vpop.f32.mrf.mxu0 }
 0x5b6   : > { %v1100_v15 = vmul.f32 %v1090_v10, %v2053_v9 }
 0x5bd   : > { %v1093_v12 = vpop.f32.mrf.mxu0 }
 0x5be   : > { %v1101_v14 = vmul.f32 %v1093_v12, %v2055_v11 }
 0x5c0   : > { %1112 = vmatpush.msra.mxu3 %v1101_v14 }
 0x5c2   : > { %1113 = vmatpush.msra.mxu3 %v1100_v15 }
 0x5c4   : > { %1114 = vmatpush.msra.mxu3 %v1099_v16 }
 0x5c6   : > { %1115 = vmatpush.msra.mxu3 %v1098_v17 }
 0x5c8   : > { %1116 = vmatpush.msra.mxu3 %v1097_v18 }
 0x5ca   : > { %1117 = vmatpush.msra.mxu3 %v1096_v19 }
 0x5cb   : > { %1606 = vmatmul.msk.f32.vlgmr.msra.gmra.mxu3 %vm860_vm11, %v2066_v20 }
 0x5cc   : > { %1614 = vmatpush.msk.msrb.mxu3 %vm646_vm0, %v1613_v21 }
 0x5ce   : > { %1186 = vmatpush.msrb.mxu3 %v1612_v22 }
 0x5d3   : > { %1615 = vmatmul.msk.f32.vlgmr.msrb.gmra.mxu3 %vm642_vm1, %v1159_v23 }
 0x64e   : > { %v1119_v24 = vpop.f32.mrf.mxu3 }
 0x64f   : > { %v1122_v25 = vsel %vm884_vm4, %v1119_v24, 0.0 }
 0x650   : > { %1123 = vadd.xlane.f32.xlu2 %v1122_v25 }
 0x656   : > { %v1188_v27 = vpop.f32.mrf.mxu3 }
 0x657   : > { %vm1191_vm6 = vcmp.gt.f32.partialorder %v1188_v27, 0.0 }
 0x658   : > { %v1616_v29 = vsel %vm1191_vm6, 1.0, %v1770_v13  ;;  %v891_v13 = vlaneseq }
 0x659   : > { %1617 = vst.msk [vmem:[%s1947_s1 + $0x8] sm:$0xf] %vm701_vm3, %v1616_v29  ;;  %1620 = vmatpush.msk.msra.mxu1 %vm646_vm0, %v1616_v29  ;;  %v1196_v30 = vsel %vm701_vm3, %v1616_v29, 0.0  ;;  %vm895_vm3 = vcmask 24576  }
 0x65a   : > { %1621 = vmatmul.msk.f32.vlgmr.msra.gmra.mxu1 %vm732_vm5, %v1618_v28  ;;  %1197 = vadd.xlane.f32.xlu1 %v1196_v30  ;;  %v2142_v34 = vand.u32 127, %v891_v13 }
 0x662   : > { %1622 = vmatmul.msk.f32.gmra.mxu1 %vm732_vm5, %v1619_v31  ;;  %886 = vadd.xlane.f32.xlu1 %v885_v32 }
 0x6c3   : > { %v1124_v36 = vpop.xlane.xlu2 %1123 }
 0x6c4   : > { %v1126_v37 = vmul.f32 %v1125_v35, %v1124_v36 }
 0x6c6   : > { %v1128_v26 = vperm.slane %v1126_v37, %v2142_v34 }
 0x6c8   : > { %1130 = vst.msk [vmem:[%s2147_s16 + $0x1] sm:$0x1] %vm895_vm3, %v1128_v26 }
 0x6cd   : > { %v1198_v38 = vpop.xlane.xlu1 %1197 }
 0x6ce   : > { %v1199_v39 = vrot.slane %v1198_v38, 4 }
 0x6d0   : > { %v1200_v40 = vadd.f32 %v1199_v39, %v1198_v38 }
 0x6d2   : > { %v1201_v41 = vrot.slane %v1200_v40, 2 }
 0x6d4   : > { %v1202_v42 = vadd.f32 %v1201_v41, %v1200_v40 }
 0x6d5   : > { %v887_v44 = vpop.xlane.xlu1 %886 }
 0x6d6   : > { %v889_v45 = vmul.f32 %v888_v43, %v887_v44  ;;  %v1203_v46 = vrot.slane %v1202_v42, 1 }
 0x6d7   : > { %v1252_v47 = vpop.f32.mrf.mxu1 }
 0x6d8   : > { %v893_v48 = vperm.slane %v889_v45, %v2142_v34  ;;  %1625 = vmatmul.msk.f32.vlgmr.msra.gmra.mxu2 %vm732_vm5, %v1252_v47  ;;  %v1204_v49 = vadd.f32 %v1203_v46, %v1202_v42 }
 0x6da   : > { %896 = vst.msk [vmem:[%s2147_s16] sm:$0x1] %vm895_vm3, %v893_v48 }
 0x6db   : > { %1652 = vpush %v1204_v49 }
 0x6df   : > { %v1255_v50 = vpop.f32.mrf.mxu1 }
 0x6e0   : > { %1626 = vmatmul.msk.f32.gmra.mxu2 %vm732_vm5, %v1255_v50 }
 0x70c   : > { %s1653_s29 = spop %1652 }
 0x70d   : > { %s1206_s14 = smax.f32 %s2247_s0, %s1653_s29  ;;  %s1384_s0 = sshll.u32 %s1381_s22, 4  ;;  %s1385_s0 = int_to_ptr.hbm [resolvable:$true] %s1384_s0 }
 0x70e   : > { %v1207_v51 = vstv %s1206_s14  ;;  %s1720_s15 = sshra.s32 %s1385_s0, 4  ;;  %s1721_s15 = int_to_ptr.hbm [resolvable:$true] %s1720_s15 }
 0x70f   : > { %1704 = vrcp.f32 %v1207_v51  ;;  %v1219_v55 = vand.u32 2147483648, %v1207_v51  ;;  %v1217_v58 = vand.u32 2147483647, %v1207_v51  ;;  %vm1213_vm8 = vweird.f32 %v1207_v51  ;;  %s1722_s24 = scalar_lea.hbm %s1721_s15, 12  ;;  %p1727_p0 = scmp.lt.s32.totalorder %s1721_s15, %s2229_s10 }
 0x710   : > { %p1723_p11 = scmp.ne.s32.totalorder %s1721_s15, %s1722_s24  ;;  %p1728_p1 = scmp.lt.s32.totalorder %s1726_s21, %s1722_s24 }
 0x711   : > { %v1220_v3 = vor.u32 1.1754944e-38, %v1219_v55  ;;  %vm1218_vm10 = vcmp.eq.f32.partialorder %v1217_v58, 8.507059e+37 }
 0x712   : > { %p1724_p12 = pnand %p1723_p11, %p1872_p5  ;;  %p1729_p2 = por %p1728_p1, %p1727_p0 }
 0x714   : > { %p1725_p13 = pneg %p1724_p12 }
 0x715   : > { %v1705_v52 = vpop.eup %1704 }
 0x716   : > { %v1209_v53 = vmul.f32 %v1705_v52, %v1207_v51  ;;  %vm1214_vm7 = vweird.f32 %v1705_v52  ;;  %p1730_p3 = pnand %p1729_p2, %p1725_p13 }
 0x717   : > { %vm1215_vm9 = vmor %vm1213_vm8, %vm1214_vm7 }
 0x718   : > { %v1210_v54 = vsub.f32 1.0, %v1209_v53 }
 0x71a   : > { %v1211_v56 = vmul.f32 %v1705_v52, %v1210_v54 }
 0x71c   : > { %v1212_v60 = vadd.f32 %v1705_v52, %v1211_v56 }
 0x71e   : > { %v1216_v4 = vsel %vm1215_vm9, %v1705_v52, %v1212_v60 }
 0x71f   : > { %v1221_v6 = vsel %vm1218_vm10, %v1220_v3, %v1216_v4 }
 0x720   : > { %1654 = vpush %v1221_v6 }
 0x75b   : > { %v1286_v8 = vpop.f32.mrf.mxu2 }
 0x763   : > { %v1289_v10 = vpop.f32.mrf.mxu2 }
 0x764   : > { %1627 = vmatpush.msk.msrb.mxu2 %vm646_vm0, %v1289_v10  ;;  %1639 = vmatpush.msk.msra.mxu3 %vm646_vm0, %v1289_v10 }
 0x766   : > { %1310 = vmatpush.msrb.mxu2 %v1286_v8  ;;  %1640 = vmatpush.msra.mxu3 %v1286_v8 }
 0x767   : > { %1628 = vmatmul.msk.f32.vlgmr.msrb.gmra.mxu2 %vm642_vm1, %v1998_v57  ;;  %1630 = vmatmul.msk.f32.vlgmr.msra.gmra.mxu3 %vm642_vm1, %v2020_v61 }
 0x76f   : > { %1629 = vmatmul.msk.f32.gmra.mxu2 %vm642_vm1, %v2009_v59  ;;  %1631 = vmatmul.msk.f32.gmra.mxu3 %vm642_vm1, %v2027_v62 }
 0x777   : > { %1632 = vmatmul.msk.f32.gmra.mxu3 %vm642_vm1, %v2034_v63 }
 0x77f   : > { %1633 = vmatmul.msk.f32.gmra.mxu3 %vm642_vm1, %v2041_v0 }
 0x7ea   : > { %v1318_v12 = vpop.f32.mrf.mxu3  ;;  %v1312_v16 = vpop.f32.mrf.mxu2 }
 0x7eb   : > { %v1332_v17 = vmul.f32 %v1318_v12, %v2049_v5  ;;  %v1330_v18 = vmul.f32 %v1312_v16, %v2045_v1 }
 0x7f2   : > { %v1321_v14 = vpop.f32.mrf.mxu3  ;;  %v1315_v63 = vpop.f32.mrf.mxu2 }
 0x7f3   : > { %v1333_v62 = vmul.f32 %v1321_v14, %v2051_v7  ;;  %v1331_v0 = vmul.f32 %v1315_v63, %v2047_v2 }
 0x7fa   : > { %v1324_v15 = vpop.f32.mrf.mxu3 }
 0x7fb   : > { %v1334_v59 = vmul.f32 %v1324_v15, %v2053_v9 }
 0x802   : > { %v1327_v57 = vpop.f32.mrf.mxu3 }
 0x803   : > { %v1335_v61 = vmul.f32 %v1327_v57, %v2055_v11 }
 0x805   : > { %1346 = vmatpush.msrb.mxu1 %v1335_v61 }
 0x807   : > { %1347 = vmatpush.msrb.mxu1 %v1334_v59 }
 0x809   : > { %1348 = vmatpush.msrb.mxu1 %v1333_v62 }
 0x80b   : > { %1349 = vmatpush.msrb.mxu1 %v1332_v17 }
 0x80d   : > { %1350 = vmatpush.msrb.mxu1 %v1331_v0 }
 0x80f   : > { %1351 = vmatpush.msrb.mxu1 %v1330_v18 }
 0x810   : > { %1634 = vmatmul.msk.f32.vlgmr.msrb.gmra.mxu1 %vm860_vm11, %v2066_v20 }
 0x811   : > { %1733 = shalt.err (!%p1730_p3)
}
 0x812   : > { %s1772_s12 = smov 64   ;;  %s1773_s13 = smov 4  }
 0x813   : > { %1657 = dma.vmem_to_hbm [thread:$0]  (%p1872_p5), %s1383_s30, 192, %s1385_s0, %s1366_s19, %s1772_s12, %s1772_s12, %s1773_s13  }
 0x814   : > { %s1655_s26 = spop %1654 }
 0x815   : > { %v1359_v5 = vstv %s1655_s26 }
 0x88d   : > { %v1353_v1 = vpop.f32.mrf.mxu1 }
 0x88e   : > { %v1356_v2 = vsel %vm884_vm4, %v1353_v1, 0.0 }
 0x88f   : > { %1357 = vadd.xlane.f32.xlu2 %v1356_v2 }
 0x902   : > { %v1358_v7 = vpop.xlane.xlu2 %1357 }
 0x903   : > { %v1360_v9 = vmul.f32 %v1359_v5, %v1358_v7 }
 0x905   : > { %v1362_v11 = vperm.slane %v1360_v9, %v2142_v34 }
 0x907   : > { %1364 = vst.msk [vmem:[%s2147_s16 + $0x2] sm:$0x1] %vm895_vm3, %v1362_v11 }
 0x908 PF: > { %p1663_p4 = scmp.ge.s32.totalorder %s1768_s20, 2  ;;  %s1402_s22 = sand.u32 1, %s1756_s17  }
 0x909   : > { %s1403_s27 = scalar_lea.sflag [#allocation3], %s1402_s22 }
 0x90a   : > { %p1660_p5 = pnand %p1663_p4, %p1876_p6 }
 0x90c   : > { %p1661_p7 = pneg %p1660_p5 }
 0x90e   : > { %1751 = dma.done.wait (%p1661_p7), %s1403_s27, 192  }
 0x90f   : > { %1753 = vsyncadd (%p1661_p7), %s1403_s27, 4294967104  ;;  %s2249_s30 = sld [smem:[#allocation5_spill]]  ;;  %p22_p8 = scmp.ge.s32.totalorder %s1859_s23, 4  }
 0x910   : > { %s2250_s19 = sld [smem:[#allocation6_spill]]  ;;  %s2251_s17 = smov %s1760_s18 }
 0x911   : > { %s2253_s20 = smov %s1859_s23  ;;  %24 = sbr.rel (!%p22_p8) target bundleno = 7 (0x7), region = 134 }
 0x915   : > { %s2252_s18 = smov %s2249_s30 }
 0x916   :  { %1416 = vsyncpa [#allocation3], 1 }
 0x917   :  { %1418 = vsyncpa [#allocation3 + $0x1], 1 }

</bundles_post_ra>
